<compile_context>
chip_gen: v7x
topology: tpu7x:2x2x1
jax: 0.10.0
libtpu: 0.0.40
codegen_flags: <defaults>
</compile_context>

<pallas_src>
import functools

import jax
import jax.numpy as jnp
from jax.experimental import pallas as pl
from jax.experimental.pallas import tpu as pltpu

HIDDEN = 128  # hidden width of the attention MLP (nn.Linear(feature_dim, 128))


def _make_kernel(matmul_dtype):
    def kernel(feat_ref, w1_ref, b1_ref, w2_ref, b2_ref, e_ref, r_ref, out_ref):
        # feat_ref: (TB, S*D)   w1_ref: (S*D, S*H) block-diag   b1_ref: (1, S*H)
        # w2_ref:   (S*H, S) block-diag   b2_ref: (1,) SMEM
        # e_ref:    (S, S*D) expand       r_ref: (S*D, D) reduce
        # out_ref:  (TB, D)
        x = feat_ref[...].astype(jnp.float32)                       # (TB, S*D)

        # ---- attention MLP: Linear(D, H) -> tanh (single lane-dense matmul) ----
        h = jnp.tanh(
            jnp.dot(x.astype(matmul_dtype), w1_ref[...],
                    preferred_element_type=jnp.float32)
            + b1_ref[...]
        )                                                            # (TB, S*H)

        # ---- Linear(H, 1) per seq position: block-diagonal w2 matmul ----
        scores = (
            jnp.dot(h, w2_ref[...], preferred_element_type=jnp.float32)
            + b2_ref[0]
        )                                                            # (TB, S)

        # ---- softmax over the sequence axis (lane-major) ----
        m = jnp.max(scores, axis=-1, keepdims=True)                  # (TB, 1)
        p = jnp.exp(scores - m)                                      # (TB, S)
        denom = jnp.sum(p, axis=-1, keepdims=True)                   # (TB, 1)
        weights = p * pl.reciprocal(denom, approx=False)             # (TB, S)

        # ---- weighted sum over S: expand -> VPU multiply -> reduce matmul ----
        wexp = jnp.dot(weights, e_ref[...],
                       preferred_element_type=jnp.float32)           # (TB, S*D)
        out = jnp.dot(wexp * x, r_ref[...],
                      preferred_element_type=jnp.float32)            # (TB, D)
        out_ref[...] = out.astype(out_ref.dtype)

    return kernel


def _round_up(x, m):
    return ((x + m - 1) // m) * m


def _vmem_limit_bytes():
    """Generation-aware VMEM limit (v7x has 64 MiB physical, v5e/v6e 128 MiB)."""
    cap = 128 * 1024 * 1024
    try:
        cap = int(pltpu.get_tpu_info().vmem_capacity_bytes)
    except Exception:
        pass
    # leave ~25% headroom for the compiler; never below the 32 MiB scoped default
    return max(32 * 1024 * 1024, min((cap * 3) // 4, 96 * 1024 * 1024))


def _pick_tb(B, S, D, H, itemsize, vmem_limit, target_bytes=4 << 20):
    """Batch rows per grid step.

    Sublane-dense (>=8), lane-dense (TB, S*D) feature tile sized toward
    `target_bytes`, bounded by a VMEM budget that accounts for double-buffered
    feature tiles plus the in-kernel live intermediates (x, h, wexp), and
    keeping at least 4 grid steps (2 per TensorCore) when the batch allows.
    """
    row_feat = S * D * itemsize                       # dense feature row
    row_work = (2 * S * D + S * H + 4 * 128) * 4      # live f32 intermediates/row
    budget = vmem_limit // 3                          # headroom for weights etc.

    def ok(t):
        return (t * row_feat <= target_bytes
                and t * (2 * row_feat + row_work) <= budget
                and t <= _round_up(B, 8))

    tb = 8
    while ok(tb * 2):
        tb *= 2
    # keep >= 4 grid steps (2 per TC on dual-TensorCore chips) when B allows
    while tb > 8 and _round_up(B, tb) // tb < 4:
        tb //= 2
    return tb


def attention_pooling(features, w1, b1, w2, b2, *, tb=None,
                      matmul_dtype=jnp.float32):
    """features: (B, S, D) float32 -> (B, D) float32."""
    B, S, D = features.shape
    H = w1.shape[1]
    SD, SH = S * D, S * H

    vmem_limit = _vmem_limit_bytes()
    if tb is None:
        tb = _pick_tb(B, S, D, H, features.dtype.itemsize, vmem_limit)

    # Lane-dense feature layout: (B, S*D) -> contiguous DMA rows.
    x2d = features.reshape(B, SD)
    B_pad = _round_up(B, tb)
    if B_pad != B:
        x2d = jnp.pad(x2d, ((0, B_pad - B), (0, 0)))
    grid = (B_pad // tb,)

    eye_s = jnp.eye(S, dtype=jnp.float32)
    w1_bd = jnp.kron(eye_s, w1.astype(jnp.float32)).astype(matmul_dtype)  # (S*D, S*H)
    b1_row = jnp.tile(b1.astype(jnp.float32).reshape(1, H), (1, S))       # (1, S*H)
    w2_bd = jnp.kron(eye_s, w2.astype(jnp.float32).reshape(H, 1))         # (S*H, S)
    b2_sc = b2.reshape(1).astype(jnp.float32)                             # SMEM scalar
    e_mat = jnp.kron(eye_s, jnp.ones((1, D), jnp.float32))                # (S, S*D)
    r_mat = jnp.kron(jnp.ones((S, 1), jnp.float32),
                     jnp.eye(D, dtype=jnp.float32))                       # (S*D, D)

    flops = int(2 * B_pad * S * D * H        # attention MLP matmul (useful work)
                + 2 * B_pad * S * H          # score projection
                + 2 * B_pad * S * D          # weight expand
                + 3 * B_pad * S * D          # multiply + reduce matmul
                + 6 * B_pad * S)             # softmax arithmetic
    transcendentals = int(B_pad * S * (H + 1))   # tanh + exp
    bytes_accessed = int(4 * (B_pad * SD + B_pad * D
                              + SD * SH + SH + SH * S + S * SD + SD * D + 1))

    kernel = _make_kernel(matmul_dtype)

    out = pl.pallas_call(
        kernel,
        out_shape=jax.ShapeDtypeStruct((B_pad, D), features.dtype),
        grid_spec=pltpu.PrefetchScalarGridSpec(
            num_scalar_prefetch=0,
            grid=grid,
            in_specs=[
                pl.BlockSpec((tb, SD), lambda b: (b, 0)),            # features (lane-dense)
                pl.BlockSpec((SD, SH), lambda b: (0, 0)),            # W1 block-diag
                pl.BlockSpec((1, SH), lambda b: (0, 0)),             # b1 tiled row
                pl.BlockSpec((SH, S), lambda b: (0, 0)),             # W2 block-diag
                pl.BlockSpec(memory_space=pltpu.MemorySpace.SMEM),   # b2 scalar
                pl.BlockSpec((S, SD), lambda b: (0, 0)),             # E expand
                pl.BlockSpec((SD, D), lambda b: (0, 0)),             # R reduce
            ],
            out_specs=pl.BlockSpec((tb, D), lambda b: (b, 0)),
        ),
        compiler_params=pltpu.CompilerParams(
            dimension_semantics=("parallel",),
            vmem_limit_bytes=vmem_limit,
        ),
        cost_estimate=pl.CostEstimate(
            flops=flops,
            transcendentals=transcendentals,
            bytes_accessed=bytes_accessed,
        ),
    )(x2d, w1_bd, b1_row, w2_bd, b2_sc, e_mat, r_mat)
    return out[:B]


def _reference(features, w1, b1, w2, b2):
    # pure-JAX reference mirroring the PyTorch module
    h = jnp.tanh(features @ w1 + b1)                # (B, S, 128)
    scores = h @ w2 + b2                            # (B, S, 1)
    weights = jax.nn.softmax(scores, axis=1)        # softmax over dim=1
    return jnp.sum(features * weights, axis=1)      # (B, D)


if __name__ == "__main__":
    key = jax.random.PRNGKey(0)
    k_feat, k_w1, k_b1, k_w2, k_b2, k_feat2 = jax.random.split(key, 6)

    B, S, D = 16, 8, 32
    features = jax.random.normal(k_feat, (B, S, D), dtype=jnp.float32)

    # deterministic init mimicking nn.Linear's uniform(-1/sqrt(fan_in), +)
    lim1 = 1.0 / (D ** 0.5)
    w1 = jax.random.uniform(k_w1, (D, HIDDEN), jnp.float32, -lim1, lim1)
    b1 = jax.random.uniform(k_b1, (HIDDEN,), jnp.float32, -lim1, lim1)
    lim2 = 1.0 / (HIDDEN ** 0.5)
    w2 = jax.random.uniform(k_w2, (HIDDEN, 1), jnp.float32, -lim2, lim2)
    b2 = jax.random.uniform(k_b2, (1,), jnp.float32, -lim2, lim2)

    out = attention_pooling(features, w1, b1, w2, b2)
    jax.block_until_ready(out)
    ref = _reference(features, w1, b1, w2, b2)
    assert out.shape == (B, D)
    assert jnp.allclose(out, ref, atol=2e-5, rtol=2e-5), "mismatch vs reference"

    # also exercise the batch-padding path (B not a multiple of the tile)
    B2 = 3
    features2 = jax.random.normal(k_feat2, (B2, S, D), dtype=jnp.float32)
    out2 = attention_pooling(features2, w1, b1, w2, b2)
    jax.block_until_ready(out2)
    ref2 = _reference(features2, w1, b1, w2, b2)
    assert out2.shape == (B2, D)
    assert jnp.allclose(out2, ref2, atol=2e-5, rtol=2e-5), "mismatch (padded)"

    print("KERNEL_OK")
</pallas_src>

<mosaic_0001>
module attributes {stable_mosaic.version = 11 : i64} {
  func.func @kernel(%arg0: i32, %arg1: memref<8x256xf32, #tpu.memory_space<vmem>>, %arg2: memref<256x1024xf32, #tpu.memory_space<vmem>>, %arg3: memref<1x1024xf32, #tpu.memory_space<vmem>>, %arg4: memref<1024x8xf32, #tpu.memory_space<vmem>>, %arg5: memref<1xf32, #tpu.memory_space<smem>>, %arg6: memref<8x256xf32, #tpu.memory_space<vmem>>, %arg7: memref<256x32xf32, #tpu.memory_space<vmem>>, %arg8: memref<8x32xf32, #tpu.memory_space<vmem>>) attributes {dimension_semantics = [#tpu.dimension_semantics<parallel>], iteration_bounds = array<i64: 2>, scalar_prefetch = 0 : i64, scratch_operands = 0 : i64, tpu.core_type = #tpu.core_type<tc>, window_params = [{transform_indices = @transform_0, window_bounds = array<i64: 8, 256>}, {pipeline_mode = #tpu.pipeline_mode<synchronous>, transform_indices = @transform_1, window_bounds = array<i64: 256, 1024>}, {pipeline_mode = #tpu.pipeline_mode<synchronous>, transform_indices = @transform_2, window_bounds = array<i64: 1, 1024>}, {pipeline_mode = #tpu.pipeline_mode<synchronous>, transform_indices = @transform_3, window_bounds = array<i64: 1024, 8>}, {transform_indices = @transform_4, window_bounds = array<i64: 1>}, {pipeline_mode = #tpu.pipeline_mode<synchronous>, transform_indices = @transform_5, window_bounds = array<i64: 8, 256>}, {pipeline_mode = #tpu.pipeline_mode<synchronous>, transform_indices = @transform_6, window_bounds = array<i64: 256, 32>}, {transform_indices = @transform_7, window_bounds = array<i64: 8, 32>}]} {
    %c0 = arith.constant 0 : index
    %c0_0 = arith.constant 0 : index
    %0 = vector.load %arg1[%c0, %c0_0] : memref<8x256xf32, #tpu.memory_space<vmem>>, vector<8x256xf32>
    %c0_1 = arith.constant 0 : index
    %c0_2 = arith.constant 0 : index
    %1 = vector.load %arg2[%c0_1, %c0_2] : memref<256x1024xf32, #tpu.memory_space<vmem>>, vector<256x1024xf32>
    %cst = arith.constant dense<0.000000e+00> : vector<8x1024xf32>
    %2 = tpu.matmul %0, %1, %cst {dimension_numbers = #tpu.dot_dimension_numbers<[1], [0], [0], [1], [0, 0, 1, 1], [], []>} : vector<8x256xf32>, vector<256x1024xf32>, vector<8x1024xf32> -> vector<8x1024xf32>
    %c0_3 = arith.constant 0 : index
    %c0_4 = arith.constant 0 : index
    %3 = vector.load %arg3[%c0_3, %c0_4] : memref<1x1024xf32, #tpu.memory_space<vmem>>, vector<1x1024xf32>
    %4 = vector.broadcast %3 : vector<1x1024xf32> to vector<8x1024xf32>
    %5 = arith.addf %2, %4 : vector<8x1024xf32>
    %6 = math.tanh %5 : vector<8x1024xf32>
    %c0_5 = arith.constant 0 : index
    %c0_6 = arith.constant 0 : index
    %7 = vector.load %arg4[%c0_5, %c0_6] : memref<1024x8xf32, #tpu.memory_space<vmem>>, vector<1024x8xf32>
    %cst_7 = arith.constant dense<0.000000e+00> : vector<8x8xf32>
    %8 = tpu.matmul %6, %7, %cst_7 {dimension_numbers = #tpu.dot_dimension_numbers<[1], [0], [0], [1], [0, 0, 1, 1], [], []>} : vector<8x1024xf32>, vector<1024x8xf32>, vector<8x8xf32> -> vector<8x8xf32>
    %c0_8 = arith.constant 0 : index
    %9 = memref.load %arg5[%c0_8] : memref<1xf32, #tpu.memory_space<smem>>
    %10 = vector.broadcast %9 : f32 to vector<8x8xf32>
    %11 = arith.addf %8, %10 : vector<8x8xf32>
    %cst_9 = arith.constant dense<0xFF800000> : vector<8xf32>
    %12 = vector.multi_reduction <maximumf>, %11, %cst_9 [1] : vector<8x8xf32> to vector<8xf32>
    %13 = vector.shape_cast %12 : vector<8xf32> to vector<8x1xf32>
    %14 = vector.broadcast %13 : vector<8x1xf32> to vector<8x8xf32>
    %15 = arith.subf %11, %14 : vector<8x8xf32>
    %16 = math.exp %15 : vector<8x8xf32>
    %cst_10 = arith.constant dense<0.000000e+00> : vector<8xf32>
    %17 = vector.multi_reduction <add>, %16, %cst_10 [1] : vector<8x8xf32> to vector<8xf32>
    %18 = vector.shape_cast %17 : vector<8xf32> to vector<8x1xf32>
    %19 = tpu.reciprocal %18 : vector<8x1xf32> -> vector<8x1xf32>
    %20 = vector.broadcast %19 : vector<8x1xf32> to vector<8x8xf32>
    %21 = arith.mulf %16, %20 : vector<8x8xf32>
    %c0_11 = arith.constant 0 : index
    %c0_12 = arith.constant 0 : index
    %22 = vector.load %arg6[%c0_11, %c0_12] : memref<8x256xf32, #tpu.memory_space<vmem>>, vector<8x256xf32>
    %cst_13 = arith.constant dense<0.000000e+00> : vector<8x256xf32>
    %23 = tpu.matmul %21, %22, %cst_13 {dimension_numbers = #tpu.dot_dimension_numbers<[1], [0], [0], [1], [0, 0, 1, 1], [], []>} : vector<8x8xf32>, vector<8x256xf32>, vector<8x256xf32> -> vector<8x256xf32>
    %24 = arith.mulf %23, %0 : vector<8x256xf32>
    %c0_14 = arith.constant 0 : index
    %c0_15 = arith.constant 0 : index
    %25 = vector.load %arg7[%c0_14, %c0_15] : memref<256x32xf32, #tpu.memory_space<vmem>>, vector<256x32xf32>
    %cst_16 = arith.constant dense<0.000000e+00> : vector<8x32xf32>
    %26 = tpu.matmul %24, %25, %cst_16 {dimension_numbers = #tpu.dot_dimension_numbers<[1], [0], [0], [1], [0, 0, 1, 1], [], []>} : vector<8x256xf32>, vector<256x32xf32>, vector<8x32xf32> -> vector<8x32xf32>
    %c0_17 = arith.constant 0 : index
    %c0_18 = arith.constant 0 : index
    %27 = vector.load %arg8[%c0_17, %c0_18] : memref<8x32xf32, #tpu.memory_space<vmem>>, vector<8x32xf32>
    tpu.vector_store %arg8[%c0_17, %c0_18], %26 {strides = array<i32>} : memref<8x32xf32, #tpu.memory_space<vmem>>, vector<8x32xf32>,
    return
  }
  func.func @transform_0(%arg0: i32) -> (i32, i32) {
    %c0_i32 = arith.constant 0 : i32
    %c0_i32_0 = arith.constant 0 : i32
    return %arg0, %c0_i32 : i32, i32
  }
  func.func @transform_1(%arg0: i32) -> (i32, i32) {
    %c0_i32 = arith.constant 0 : i32
    %c0_i32_0 = arith.constant 0 : i32
    %c0_i32_1 = arith.constant 0 : i32
    return %c0_i32, %c0_i32_0 : i32, i32
  }
  func.func @transform_2(%arg0: i32) -> (i32, i32) {
    %c0_i32 = arith.constant 0 : i32
    %c0_i32_0 = arith.constant 0 : i32
    %c0_i32_1 = arith.constant 0 : i32
    return %c0_i32, %c0_i32_0 : i32, i32
  }
  func.func @transform_3(%arg0: i32) -> (i32, i32) {
    %c0_i32 = arith.constant 0 : i32
    %c0_i32_0 = arith.constant 0 : i32
    %c0_i32_1 = arith.constant 0 : i32
    return %c0_i32, %c0_i32_0 : i32, i32
  }
  func.func @transform_4(%arg0: i32) -> i32 {
    %c0_i32 = arith.constant 0 : i32
    %c0_i32_0 = arith.constant 0 : i32
    return %c0_i32 : i32
  }
  func.func @transform_5(%arg0: i32) -> (i32, i32) {
    %c0_i32 = arith.constant 0 : i32
    %c0_i32_0 = arith.constant 0 : i32
    %c0_i32_1 = arith.constant 0 : i32
    return %c0_i32, %c0_i32_0 : i32, i32
  }
  func.func @transform_6(%arg0: i32) -> (i32, i32) {
    %c0_i32 = arith.constant 0 : i32
    %c0_i32_0 = arith.constant 0 : i32
    %c0_i32_1 = arith.constant 0 : i32
    return %c0_i32, %c0_i32_0 : i32, i32
  }
  func.func @transform_7(%arg0: i32) -> (i32, i32) {
    %c0_i32 = arith.constant 0 : i32
    %c0_i32_0 = arith.constant 0 : i32
    return %arg0, %c0_i32 : i32, i32
  }
}

</mosaic_0001>

<bundles_post_ra>
// kernel: tpu_custom_call.1
= control target key start
LH: loop header
LB: loop body
LE: loop exit
PB: predicated region body
PF: predicated region fallthrough
CT: control target
= control target key end

     0   :  { %s3082_s0 = inlined_call_operand.hbm [shape: f32[16,256], index: 0, kind: input, shape index: {}]   ;;  %s3083_s1 = inlined_call_operand.hbm [shape: f32[256,1024], index: 1, kind: input, shape index: {}]   ;;  %s3084_s2 = inlined_call_operand.hbm [shape: f32[1,1024], index: 2, kind: input, shape index: {}]   ;;  %s3085_s3 = inlined_call_operand.hbm [shape: f32[1024,8], index: 3, kind: input, shape index: {}]   ;;  %s3086_s4 = inlined_call_operand.<no memory space> [shape: f32[1], index: 4, kind: input, shape index: {}]   ;;  %s3087_s5 = inlined_call_operand.hbm [shape: f32[8,256], index: 5, kind: input, shape index: {}]   ;;  %s3088_s6 = inlined_call_operand.hbm [shape: f32[256,32], index: 6, kind: input, shape index: {}]   ;;  %s3089_s7 = inlined_call_operand.hbm [shape: f32[16,32], index: 7, kind: output, shape index: {}]  }
   0x1   :  { %12 = sst [smem:[#allocation2]] %s3086_s4 }
   0x2   :  { %13 = vsyncpa [#allocation4], 0 }
   0x3   :  { %15 = vsyncpa [#allocation4 + $0x1], 0 }
   0x4   :  { %16 = vsyncpa [#allocation7], 0 }
   0x5   :  { %17 = vsyncpa [#allocation10], 0 }
   0x6   :  { %18 = vsyncpa [#allocation13], 0 }
   0x7   :  { %19 = vsyncpa [#allocation5], 0 }
   0x8   :  { %21 = vsyncpa [#allocation5 + $0x1], 0  ;;  %s2738_s26 = smov 0   ;;  %s2740_s27 = smov 0  }
   0x9   :  { %s2742_s28 = smov 0   ;;  %s2744_s29 = smov 0  }
   0xa LB: > { %s2683_s4 = smov [#allocation6]   ;;  %s2759_s8 = sadd.s32 4294967295, %s2681_s29   ;;  %s2681_s29 = sphi %s2744_s29, %s3114_s29   ;;  %s2677_s28 = sphi %s2742_s28, %s3113_s28   ;;  %s2673_s27 = sphi %s2740_s27, %s3112_s27   ;;  %s2669_s26 = sphi %s2738_s26, %s3111_s26  }
   0xb   : > { %s222_s30 = sshll.u32 %s2683_s4, 4  ;;  %p1694_p0 = scmp.ge.s32.totalorder %s2681_s29, 1  ;;  %s2764_s30 = int_to_ptr.vmem [resolvable:$true] %s222_s30 }
   0xc   : > { %p3090_p1 = scmp.eq.s32.totalorder %s2759_s8, 0  ;;  %p210_p2 = scmp.lt.s32.totalorder %s2681_s29, 3 }
   0xd   : > { %s2684_s10 = smov [#allocation9]   ;;  %s2685_s13 = smov [#allocation8]  }
   0xe   : > { %p2766_p3 = pnand %p1694_p0, %p210_p2  ;;  %s246_s11 = sshll.u32 %s2684_s10, 4  ;;  %s2779_s11 = int_to_ptr.vmem [resolvable:$true] %s246_s11 }
   0xf   : > { %s2781_s14 = sshll.u32 %s2685_s13, 4  ;;  %s2433_s17 = scalar_lea.hbm %s3083_s1, 32768  ;;  %s237_s14 = int_to_ptr.vmem [resolvable:$true] %s2781_s14 }
  0x10   : > { %s3093_s9 = scalar_select %p2766_p3, 1, 0 }
  0x11   : > { %p2333_p5 = pneg %p2766_p3  ;;  %p2434_p7 = scmp.ne.s32.totalorder %s3083_s1, %s2433_s17 }
  0x12   : > { %p2440_p11 = scmp.lt.u32.totalorder %s2433_s17, %s3083_s1 }
  0x13   : > { %p2775_p6 = pnand %p2333_p5, %p3090_p1 }
  0x15   : > { %p2791_p8 = pneg %p2775_p6 }
  0x17   : > { %p2436_p9 = pnand %p2791_p8, %p2434_p7 }
  0x19   : > { %p2437_p10 = pneg %p2436_p9 }
  0x1b   : > { %p2442_p12 = pnand %p2440_p11, %p2437_p10 }
  0x1d   : > { %2445 = shalt.err (!%p2442_p12)
}
  0x1e   : > { %s2446_s23 = scalar_lea.vmem %s2764_s30, 32768  ;;  %p2454_p5 = scmp.lt.s32.totalorder %s2764_s30, %s2764_s30 }
  0x1f   : > { %p2447_p13 = scmp.ne.s32.totalorder %s2764_s30, %s2446_s23  ;;  %p2455_p4 = scmp.lt.s32.totalorder %s2446_s23, %s2446_s23 }
  0x21   : > { %p2449_p0 = pnand %p2447_p13, %p2791_p8  ;;  %p2456_p7 = por %p2455_p4, %p2454_p5 }
  0x23   : > { %p2450_p2 = pneg %p2449_p0 }
  0x25   : > { %p2457_p9 = pnand %p2456_p7, %p2450_p2 }
  0x27   : > { %2460 = shalt.err (!%p2457_p9)
}
  0x28   : > { %s2686_s24 = smov 1024   ;;  %s2687_s25 = smov 64  }
  0x29   : > { %2336 = dma.hbm_to_vmem [thread:$0]  (!%p2775_p6), %s3083_s1, 32768, %s2764_s30, [#allocation7], %s2686_s24, %s2686_s24, %s2687_s25  }
  0x2a   : > { %s2461_s16 = scalar_lea.hbm %s3085_s3, 16384 }
  0x2b   : > { %p2462_p4 = scmp.ne.s32.totalorder %s3085_s3, %s2461_s16  ;;  %p2468_p12 = scmp.lt.u32.totalorder %s2461_s16, %s3085_s3 }
  0x2d   : > { %p2464_p10 = pnand %p2462_p4, %p2791_p8 }
  0x2f   : > { %p2465_p11 = pneg %p2464_p10 }
  0x31   : > { %p2470_p13 = pnand %p2468_p12, %p2465_p11 }
  0x33   : > { %2473 = shalt.err (!%p2470_p13)
}
  0x34   : > { %s2474_s30 = scalar_lea.vmem %s2779_s11, 16384  ;;  %p2482_p7 = scmp.lt.s32.totalorder %s2779_s11, %s2779_s11 }
  0x35   : > { %p2475_p0 = scmp.ne.s32.totalorder %s2779_s11, %s2474_s30  ;;  %p2483_p9 = scmp.lt.s32.totalorder %s2474_s30, %s2474_s30 }
  0x37   : > { %p2477_p2 = pnand %p2475_p0, %p2791_p8  ;;  %p2484_p4 = por %p2483_p9, %p2482_p7 }
  0x39   : > { %p2478_p5 = pneg %p2477_p2 }
  0x3b   : > { %p2485_p10 = pnand %p2484_p4, %p2478_p5 }
  0x3d   : > { %2488 = shalt.err (!%p2485_p10)
}
  0x3e   : > { %s2688_s22 = smov 128   ;;  %s2689_s23 = smov 8  }
  0x3f   : > { %2342 = dma.hbm_to_vmem [thread:$0]  (!%p2775_p6), %s3085_s3, 16384, %s2779_s11, [#allocation10], %s2688_s22, %s2688_s22, %s2689_s23  }
  0x40   : > { %s2489_s13 = scalar_lea.hbm %s3084_s2, 128 }
  0x41   : > { %p2490_p11 = scmp.ne.s32.totalorder %s3084_s2, %s2489_s13  ;;  %p2496_p0 = scmp.lt.u32.totalorder %s2489_s13, %s3084_s2 }
  0x43   : > { %p2492_p12 = pnand %p2490_p11, %p2791_p8 }
  0x45   : > { %p2493_p13 = pneg %p2492_p12 }
  0x47   : > { %p2498_p2 = pnand %p2496_p0, %p2493_p13 }
  0x49   : > { %2501 = shalt.err (!%p2498_p2)
}
  0x4a   : > { %s2502_s19 = scalar_lea.vmem %s237_s14, 128  ;;  %p2510_p4 = scmp.lt.s32.totalorder %s237_s14, %s237_s14 }
  0x4b   : > { %p2503_p5 = scmp.ne.s32.totalorder %s237_s14, %s2502_s19  ;;  %p2511_p10 = scmp.lt.s32.totalorder %s2502_s19, %s2502_s19 }
  0x4d   : > { %p2505_p7 = pnand %p2503_p5, %p2791_p8  ;;  %p2512_p1 = por %p2511_p10, %p2510_p4 }
  0x4f   : > { %p2506_p9 = pneg %p2505_p7 }
  0x51   : > { %p2513_p3 = pnand %p2512_p1, %p2506_p9 }
  0x53   : > { %2516 = shalt.err (!%p2513_p3)
}
  0x54   : > { %2339 = dma.hbm_to_vmem [thread:$0]  (!%p2775_p6), %s3084_s2, 128, %s237_s14, [#allocation7]  }
  0x55   : > { %s2690_s30 = smov [#allocation11]   ;;  %s2691_s25 = smov [#allocation12]  }
  0x56   : > { %s263_s24 = sshll.u32 %s2690_s30, 4  ;;  %s273_s4 = sshll.u32 %s2691_s25, 4  ;;  %s264_s24 = int_to_ptr.vmem [resolvable:$true] %s263_s24  ;;  %s274_s4 = int_to_ptr.vmem [resolvable:$true] %s273_s4 }
  0x57   : > { %s2517_s15 = scalar_lea.hbm %s3087_s5, 256 }
  0x58   : > { %p2518_p1 = scmp.ne.s32.totalorder %s3087_s5, %s2517_s15  ;;  %p2524_p12 = scmp.lt.u32.totalorder %s2517_s15, %s3087_s5 }
  0x5a   : > { %p2520_p3 = pnand %p2518_p1, %p2791_p8 }
  0x5c   : > { %p2521_p11 = pneg %p2520_p3 }
  0x5e   : > { %p2526_p13 = pnand %p2524_p12, %p2521_p11 }
  0x60   : > { %2529 = shalt.err (!%p2526_p13)
}
  0x61   : > { %s2530_s14 = scalar_lea.vmem %s264_s24, 256  ;;  %p2538_p7 = scmp.lt.s32.totalorder %s264_s24, %s264_s24 }
  0x62   : > { %p2531_p0 = scmp.ne.s32.totalorder %s264_s24, %s2530_s14  ;;  %p2539_p9 = scmp.lt.s32.totalorder %s2530_s14, %s2530_s14 }
  0x64   : > { %p2533_p2 = pnand %p2531_p0, %p2791_p8  ;;  %p2540_p4 = por %p2539_p9, %p2538_p7 }
  0x66   : > { %p2534_p5 = pneg %p2533_p2 }
  0x68   : > { %p2541_p10 = pnand %p2540_p4, %p2534_p5 }
  0x6a   : > { %2544 = shalt.err (!%p2541_p10)
}
  0x6b   : > { %2345 = dma.hbm_to_vmem [thread:$0]  (!%p2775_p6), %s3087_s5, 256, %s264_s24, [#allocation10]  }
  0x6c   : > { %s2545_s10 = scalar_lea.hbm %s3088_s6, 4096 }
  0x6d   : > { %p2546_p1 = scmp.ne.s32.totalorder %s3088_s6, %s2545_s10  ;;  %p2552_p12 = scmp.lt.u32.totalorder %s2545_s10, %s3088_s6 }
  0x6f   : > { %p2548_p3 = pnand %p2546_p1, %p2791_p8 }
  0x71   : > { %p2549_p11 = pneg %p2548_p3 }
  0x73   : > { %p2554_p13 = pnand %p2552_p12, %p2549_p11 }
  0x75   : > { %2557 = shalt.err (!%p2554_p13)
}
  0x76   : > { %s2558_s18 = scalar_lea.vmem %s274_s4, 4096  ;;  %p2566_p7 = scmp.lt.s32.totalorder %s274_s4, %s274_s4 }
  0x77   : > { %p2559_p0 = scmp.ne.s32.totalorder %s274_s4, %s2558_s18  ;;  %p2567_p9 = scmp.lt.s32.totalorder %s2558_s18, %s2558_s18 }
  0x79   : > { %p2561_p2 = pnand %p2559_p0, %p2791_p8  ;;  %p2568_p4 = por %p2567_p9, %p2566_p7 }
  0x7b   : > { %p2562_p5 = pneg %p2561_p2 }
  0x7d   : > { %p2569_p10 = pnand %p2568_p4, %p2562_p5 }
  0x7f   : > { %2572 = shalt.err (!%p2569_p10)
}
  0x80   : > { %2348 = dma.hbm_to_vmem [thread:$0]  (!%p2775_p6), %s3088_s6, 4096, %s274_s4, [#allocation13], %s2688_s22, %s2688_s22, %s2689_s23  }
  0x81   : > { %s1693_s12 = sadd.s32 4294967294, %s2681_s29   ;;  %s2898_s20 = sadd.s32 1, %s2681_s29  }
  0x82   : > { %s34_s14 = sadd.s32 1, %s2677_s28  ;;  %s31_s11 = ssub.s32 %s2681_s29, %s2898_s20 }
  0x83   : > { %p41_p8 = scmp.ne.s32.totalorder %s2677_s28, %s2673_s27  ;;  %p32_p1 = scmp.eq.s32.totalorder %s31_s11, 0 }
  0x84   : > { %p42_p3 = scmp.eq.s32.totalorder %s2681_s29, 0  ;;  %p47_p11 = scmp.ne.s32.totalorder %s2673_s27, %s2669_s26 }
  0x85   : > { %p197_p12 = scmp.eq.s32.totalorder %s2759_s8, 1  ;;  %p3096_p0 = scmp.eq.s32.totalorder %s2759_s8, 0 }
  0x86   : > { %s2910_s21 = scalar_select %p32_p1, %s2677_s28, %s34_s14  }
  0x87   : > { %p43_p13 = por %p42_p3, %p41_p8  ;;  %p2914_p2 = por %p3096_p0, %p47_p11 }
  0x88   : > { %p2918_p6 = por %p197_p12, %p41_p8  ;;  %p203_p5 = scmp.eq.s32.totalorder %s1693_s12, 1 }
  0x89   : > { %p2362_p7 = scmp.lt.s32.totalorder %s2681_s29, 2  ;;  %s287_s23 = sand.u32 1, %s2677_s28  }
  0x8a   : > { %s3098_s22 = scalar_select %p2918_p6, 1, 0 }
  0x8b   : > { %p2924_p9 = por %p203_p5, %p47_p11  ;;  %s1701_s25 = sshll.u32 %s287_s23, 4 }
  0x8c   : > { %s1717_s10 = sshll.u32 %s2681_s29, 8  ;;  %s291_s17 = scalar_lea.vmem [#allocation3], %s1701_s25 }
  0x8d   : > { %s3099_s4 = scalar_select %p2924_p9, 1, 0 }
  0x8e   : > { %s2932_s16 = scalar_lea.hbm %s3082_s0, %s1717_s10  ;;  %s299_s18 = sshll.u32 %s291_s17, 4  ;;  %s2938_s18 = int_to_ptr.vmem [resolvable:$true] %s299_s18 }
  0x8f   : > { %p2934_p4 = pnand %p2362_p7, %p43_p13  ;;  %s288_s19 = scalar_lea.sflag [#allocation4], %s287_s23 }
  0x90   : > { %s2573_s12 = scalar_lea.hbm %s2932_s16, 256  ;;  %s2578_s25 = scalar_lea.hbm %s3082_s0, 512 }
  0x91   : > { %p2574_p10 = scmp.ne.s32.totalorder %s2932_s16, %s2573_s12  ;;  %p2575_p8 = pneg %p2934_p4 }
  0x92   : > { %p2579_p11 = scmp.lt.u32.totalorder %s2932_s16, %s3082_s0  ;;  %p2580_p12 = scmp.lt.u32.totalorder %s2578_s25, %s2573_s12 }
  0x93   : > { %p2576_p1 = pnand %p2575_p8, %p2574_p10  ;;  %p2582_p0 = scmp.lt.u32.totalorder %s2573_s12, %s2932_s16 }
  0x94   : > { %p2581_p13 = por %p2580_p12, %p2579_p11 }
  0x95   : > { %p2577_p3 = pneg %p2576_p1 }
  0x96   : > { %p2583_p5 = por %p2582_p0, %p2581_p13 }
  0x98   : > { %p2584_p7 = pnand %p2583_p5, %p2577_p3 }
  0x9a   : > { %2587 = shalt.err (!%p2584_p7)
}
  0x9b   : > { %s2588_s23 = scalar_lea.vmem %s2938_s18, 256  ;;  %s2692_s15 = smov [#allocation3]  }
  0x9c   : > { %p2589_p10 = scmp.ne.s32.totalorder %s2938_s18, %s2588_s23  ;;  %s2593_s17 = sshll.u32 %s2692_s15, 4  ;;  %s2594_s17 = int_to_ptr.vmem [resolvable:$false] %s2593_s17 }
  0x9d   : > { %s2595_s14 = scalar_lea.vmem %s2594_s17, 512  ;;  %p2596_p6 = scmp.lt.s32.totalorder %s2938_s18, %s2594_s17 }
  0x9e   : > { %p2591_p1 = pnand %p2589_p10, %p2575_p8  ;;  %p2597_p11 = scmp.lt.s32.totalorder %s2595_s14, %s2588_s23 }
  0xa0   : > { %p2592_p9 = pneg %p2591_p1  ;;  %p2598_p12 = por %p2597_p11, %p2596_p6 }
  0xa2   : > { %p2599_p13 = pnand %p2598_p12, %p2592_p9 }
  0xa4   : > { %2602 = shalt.err (!%p2599_p13)
}
  0xa5   : > { %2352 = dma.hbm_to_vmem [thread:$0]  (!%p2934_p4), %s2932_s16, 256, %s2938_s18, %s288_s19  }
  0xa6   : > { %p3101_p3 = scmp.ne.s32.totalorder %s3093_s9, 0 }
  0xa7   : > { %s2968_s12 = sand.u32 (!%p3101_p3), 1, %s2673_s27  }
  0xa8   : > { %308 = sbr.rel (%p3101_p3) target bundleno = 1523 (0x5f3), region = 48  ;;  %s1705_s11 = sshll.u32 (!%p3101_p3), %s2968_s12, 4 }
  0xa9   : > { %s311_s25 = scalar_lea.sflag (!%p3101_p3), [#allocation4], %s2968_s12  ;;  %s2972_s10 = scalar_lea.vmem (!%p3101_p3), [#allocation3], %s1705_s11 }
  0xaf   : > { %2648 = dma.done.wait (%p2914_p2), %s311_s25, 256  }
  0xb0   : > { %2650 = vsyncadd (%p2914_p2), %s311_s25, 4294967040  ;;  %p3102_p6 = scmp.eq.s32.totalorder %s2759_s8, 0 }
  0xb2   : > { %2652 = dma.done.wait (%p3102_p6), [#allocation7], 32896   ;;  %p3103_p9 = pmov %p3102_p6 }
  0xb3   : > { %p3104_p4 = pmov %p3102_p6 }
  0xb4   : > { %2654 = vsyncadd (%p3103_p9), [#allocation7], 4294934400 }
  0xb5   : > { %2656 = dma.done.wait (%p3104_p4), [#allocation10], 16640   ;;  %p3105_p8 = pmov %p3104_p4 }
  0xb6   : > { %p3106_p0 = pmov %p3104_p4 }
  0xb7   : > { %2658 = vsyncadd (%p3105_p8), [#allocation10], 4294950656 }
  0xb8   : > { %2660 = dma.done.wait (%p3106_p0), [#allocation13], 4096   ;;  %p3107_p5 = pmov %p3106_p0 }
  0xb9   : > { %v368_v0 = vld [vmem:[#allocation6 + $0x8] sm:$0xff]  ;;  %v370_v2 = vld [vmem:[#allocation6 + $0x18] sm:$0xff]  ;;  %v367_v5 = vld [vmem:[#allocation6] sm:$0xff]  ;;  %s1085_s9 = sld [smem:[#allocation2]]  ;;  %vm1367_vm0 = vcmask 64512   ;;  %s1711_s30 = sshll.u32 %s2968_s12, 3 }
  0xba   : > { %2662 = vsyncadd (%p3107_p5), [#allocation13], 4294963200  ;;  %v376_v1 = vld [vmem:[#allocation6 + $0x48] sm:$0xff]  ;;  %v378_v4 = vld [vmem:[#allocation6 + $0x58] sm:$0xff]  ;;  %s1714_s16 = sshll.u32 %s2759_s8, 7  ;;  %s364_s18 = scalar_lea.vmem [#allocation14], %s1711_s30 }
  0xbb   : > { %v1893_v3 = vpack.c.bf16 %v376_v1, %v368_v0  ;;  %v375_v6 = vld [vmem:[#allocation6 + $0x40] sm:$0xff]  ;;  %v1957_v7 = vpack.c.bf16 %v378_v4, %v370_v2  ;;  %v369_v9 = vld [vmem:[#allocation6 + $0x10] sm:$0xff]  ;;  %v384_v11 = vld [vmem:[#allocation6 + $0x88] sm:$0xff]  ;;  %s1575_s24 = sshll.u32 %s364_s18, 4  ;;  %vm1559_vm1 = vcmask 261120   ;;  %s3038_s23 = scalar_lea.hbm %s3089_s7, %s1714_s16  ;;  %s3040_s24 = int_to_ptr.vmem [resolvable:$true] %s1575_s24 }
  0xbc   : > { %v1895_v8 = vpack.c.bf16 %v375_v6, %v367_v5  ;;  %v377_v10 = vld [vmem:[#allocation6 + $0x50] sm:$0xff]  ;;  %v392_v13 = vld [vmem:[#allocation6 + $0xc8] sm:$0xff]  ;;  %v386_v14 = vld [vmem:[#allocation6 + $0x98] sm:$0xff]  ;;  %s1562_s15 = scalar_lea.sflag [#allocation5], %s2968_s12  ;;  %s2603_s17 = scalar_lea.vmem %s3040_s24, 128 }
  0xbd   : > { %1894 = vmatprep.subr.bf16.mxu0 %v1893_v3  ;;  %v1959_v12 = vpack.c.bf16 %v377_v10, %v369_v9  ;;  %v394_v15 = vld [vmem:[#allocation6 + $0xd8] sm:$0xff]  ;;  %1958 = vmatprep.subr.bf16.mxu1 %v1957_v7  ;;  %v1897_v16 = vpack.c.bf16 %v392_v13, %v384_v11  ;;  %v383_v18 = vld [vmem:[#allocation6 + $0x80] sm:$0xff]  ;;  %v385_v20 = vld [vmem:[#allocation6 + $0x90] sm:$0xff]  ;;  %p2604_p2 = scmp.ne.s32.totalorder %s3040_s24, %s2603_s17  ;;  %p3108_p7 = scmp.ne.s32.totalorder %s3098_s22, 0 }
  0xbe   : > { %1896 = vmatpush1.bf16.msra.mxu0 %v1895_v8  ;;  %v1961_v17 = vpack.c.bf16 %v394_v15, %v386_v14  ;;  %v391_v19 = vld [vmem:[#allocation6 + $0xc0] sm:$0xff]  ;;  %v393_v22 = vld [vmem:[#allocation6 + $0xd0] sm:$0xff]  ;;  %v400_v23 = vld [vmem:[#allocation6 + $0x108] sm:$0xff]  ;;  %s2694_s8 = smov [#allocation14]  }
  0xbf   : > { %1960 = vmatpush1.bf16.msra.mxu1 %v1959_v12  ;;  %v1899_v21 = vpack.c.bf16 %v391_v19, %v383_v18  ;;  %v408_v24 = vld [vmem:[#allocation6 + $0x148] sm:$0xff]  ;;  %1898 = vmatprep.subr.bf16.mxu0 %v1897_v16  ;;  %v1963_v25 = vpack.c.bf16 %v393_v22, %v385_v20  ;;  %v402_v27 = vld [vmem:[#allocation6 + $0x118] sm:$0xff]  ;;  %v399_v29 = vld [vmem:[#allocation6 + $0x100] sm:$0xff]  ;;  %p2605_p10 = pnand %p2604_p2, %p3108_p7  ;;  %s2607_s14 = sshll.u32 %s2694_s8, 4  ;;  %s2608_s14 = int_to_ptr.vmem [resolvable:$false] %s2607_s14 }
  0xc0   : > { %1962 = vmatprep.subr.bf16.mxu1 %v1961_v17  ;;  %v1901_v26 = vpack.c.bf16 %v408_v24, %v400_v23  ;;  %v410_v28 = vld [vmem:[#allocation6 + $0x158] sm:$0xff]  ;;  %v407_v31 = vld [vmem:[#allocation6 + $0x140] sm:$0xff]  ;;  %v401_v32 = vld [vmem:[#allocation6 + $0x110] sm:$0xff]  ;;  %s2609_s11 = scalar_lea.vmem %s2608_s14, 256  ;;  %p2610_p11 = scmp.lt.s32.totalorder %s3040_s24, %s2608_s14 }
  0xc1   : > { %v1965_v30 = vpack.c.bf16 %v410_v28, %v402_v27  ;;  %v409_v33 = vld [vmem:[#allocation6 + $0x150] sm:$0xff]  ;;  %v1903_v34 = vpack.c.bf16 %v407_v31, %v399_v29  ;;  %v416_v35 = vld [vmem:[#allocation6 + $0x188] sm:$0xff]  ;;  %v418_v37 = vld [vmem:[#allocation6 + $0x198] sm:$0xff]  ;;  %p2606_p1 = pneg %p2605_p10  ;;  %p2611_p12 = scmp.lt.s32.totalorder %s2609_s11, %s2603_s17 }
  0xc2   : > { %1900 = vmatpush1.bf16.msra.mxu0 %v1899_v21  ;;  %v424_v36 = vld [vmem:[#allocation6 + $0x1c8] sm:$0xff]  ;;  %v1967_v38 = vpack.c.bf16 %v409_v33, %v401_v32  ;;  %v426_v40 = vld [vmem:[#allocation6 + $0x1d8] sm:$0xff]  ;;  %v415_v41 = vld [vmem:[#allocation6 + $0x180] sm:$0xff] }
  0xc3   : > { %1964 = vmatpush1.bf16.msra.mxu1 %v1963_v25  ;;  %1902 = vmatprep.subr.bf16.mxu0 %v1901_v26  ;;  %v1905_v39 = vpack.c.bf16 %v424_v36, %v416_v35  ;;  %v423_v42 = vld [vmem:[#allocation6 + $0x1c0] sm:$0xff]  ;;  %v1969_v43 = vpack.c.bf16 %v426_v40, %v418_v37  ;;  %v417_v44 = vld [vmem:[#allocation6 + $0x190] sm:$0xff]  ;;  %v432_v46 = vld [vmem:[#allocation6 + $0x208] sm:$0xff]  ;;  %p2612_p13 = por %p2611_p12, %p2610_p11 }
  0xc4   : > { %1966 = vmatprep.subr.bf16.mxu1 %v1965_v30  ;;  %v425_v45 = vld [vmem:[#allocation6 + $0x1d0] sm:$0xff]  ;;  %v440_v47 = vld [vmem:[#allocation6 + $0x248] sm:$0xff]  ;;  %v434_v48 = vld [vmem:[#allocation6 + $0x218] sm:$0xff]  ;;  %v1907_v50 = vpack.c.bf16 %v423_v42, %v415_v41 }
  0xc5   : > { %v442_v49 = vld [vmem:[#allocation6 + $0x258] sm:$0xff]  ;;  %v1971_v51 = vpack.c.bf16 %v425_v45, %v417_v44  ;;  %v1909_v52 = vpack.c.bf16 %v440_v47, %v432_v46  ;;  %v431_v53 = vld [vmem:[#allocation6 + $0x200] sm:$0xff]  ;;  %v433_v55 = vld [vmem:[#allocation6 + $0x210] sm:$0xff]  ;;  %p2613_p3 = pnand %p2612_p13, %p2606_p1 }
  0xc6   : > { %1904 = vmatpush1.bf16.msra.mxu0 %v1903_v34  ;;  %v439_v54 = vld [vmem:[#allocation6 + $0x240] sm:$0xff]  ;;  %v1973_v56 = vpack.c.bf16 %v442_v49, %v434_v48  ;;  %v441_v57 = vld [vmem:[#allocation6 + $0x250] sm:$0xff]  ;;  %v448_v58 = vld [vmem:[#allocation6 + $0x288] sm:$0xff] }
  0xc7   : > { %1968 = vmatpush1.bf16.msra.mxu1 %v1967_v38  ;;  %1906 = vmatprep.subr.bf16.mxu0 %v1905_v39  ;;  %v456_v59 = vld [vmem:[#allocation6 + $0x2c8] sm:$0xff]  ;;  %v450_v60 = vld [vmem:[#allocation6 + $0x298] sm:$0xff]  ;;  %v1911_v62 = vpack.c.bf16 %v439_v54, %v431_v53  ;;  %v1975_v63 = vpack.c.bf16 %v441_v57, %v433_v55  ;;  %v447_v1 = vld [vmem:[#allocation6 + $0x280] sm:$0xff] }
  0xc8   : > { %1970 = vmatprep.subr.bf16.mxu1 %v1969_v43  ;;  %v458_v61 = vld [vmem:[#allocation6 + $0x2d8] sm:$0xff]  ;;  %v1913_v0 = vpack.c.bf16 %v456_v59, %v448_v58  ;;  %v455_v2 = vld [vmem:[#allocation6 + $0x2c0] sm:$0xff]  ;;  %v449_v3 = vld [vmem:[#allocation6 + $0x290] sm:$0xff] }
  0xc9   : > { %v1977_v4 = vpack.c.bf16 %v458_v61, %v450_v60  ;;  %v457_v5 = vld [vmem:[#allocation6 + $0x2d0] sm:$0xff]  ;;  %v464_v6 = vld [vmem:[#allocation6 + $0x308] sm:$0xff]  ;;  %v466_v8 = vld [vmem:[#allocation6 + $0x318] sm:$0xff]  ;;  %v1915_v10 = vpack.c.bf16 %v455_v2, %v447_v1 }
  0xca   : > { %1908 = vmatpush1.bf16.msra.mxu0 %v1907_v50  ;;  %v472_v7 = vld [vmem:[#allocation6 + $0x348] sm:$0xff]  ;;  %v474_v9 = vld [vmem:[#allocation6 + $0x358] sm:$0xff]  ;;  %v1979_v11 = vpack.c.bf16 %v457_v5, %v449_v3  ;;  %v463_v13 = vld [vmem:[#allocation6 + $0x300] sm:$0xff] }
  0xcb   : > { %1972 = vmatpush1.bf16.msra.mxu1 %v1971_v51  ;;  %1910 = vmatprep.subr.bf16.mxu0 %v1909_v52  ;;  %v1917_v12 = vpack.c.bf16 %v472_v7, %v464_v6  ;;  %v471_v14 = vld [vmem:[#allocation6 + $0x340] sm:$0xff]  ;;  %v465_v15 = vld [vmem:[#allocation6 + $0x310] sm:$0xff]  ;;  %v1981_v16 = vpack.c.bf16 %v474_v9, %v466_v8  ;;  %v480_v18 = vld [vmem:[#allocation6 + $0x388] sm:$0xff] }
  0xcc   : > { %1974 = vmatprep.subr.bf16.mxu1 %v1973_v56  ;;  %v473_v17 = vld [vmem:[#allocation6 + $0x350] sm:$0xff]  ;;  %v488_v19 = vld [vmem:[#allocation6 + $0x3c8] sm:$0xff]  ;;  %v482_v20 = vld [vmem:[#allocation6 + $0x398] sm:$0xff]  ;;  %v1919_v22 = vpack.c.bf16 %v471_v14, %v463_v13 }
  0xcd   : > { %v490_v21 = vld [vmem:[#allocation6 + $0x3d8] sm:$0xff]  ;;  %v1983_v23 = vpack.c.bf16 %v473_v17, %v465_v15  ;;  %v1921_v24 = vpack.c.bf16 %v488_v19, %v480_v18  ;;  %v479_v25 = vld [vmem:[#allocation6 + $0x380] sm:$0xff]  ;;  %v481_v27 = vld [vmem:[#allocation6 + $0x390] sm:$0xff] }
  0xce   : > { %1912 = vmatpush1.bf16.msra.mxu0 %v1911_v62  ;;  %v487_v26 = vld [vmem:[#allocation6 + $0x3c0] sm:$0xff]  ;;  %v1985_v28 = vpack.c.bf16 %v490_v21, %v482_v20  ;;  %v489_v29 = vld [vmem:[#allocation6 + $0x3d0] sm:$0xff]  ;;  %v496_v30 = vld [vmem:[#allocation6 + $0x408] sm:$0xff] }
  0xcf   : > { %1976 = vmatpush1.bf16.msra.mxu1 %v1975_v63  ;;  %1914 = vmatprep.subr.bf16.mxu0 %v1913_v0  ;;  %v504_v31 = vld [vmem:[#allocation6 + $0x448] sm:$0xff]  ;;  %v498_v32 = vld [vmem:[#allocation6 + $0x418] sm:$0xff]  ;;  %v1923_v34 = vpack.c.bf16 %v487_v26, %v479_v25  ;;  %v1987_v35 = vpack.c.bf16 %v489_v29, %v481_v27  ;;  %v495_v37 = vld [vmem:[#allocation6 + $0x400] sm:$0xff] }
  0xd0   : > { %1978 = vmatprep.subr.bf16.mxu1 %v1977_v4  ;;  %v506_v33 = vld [vmem:[#allocation6 + $0x458] sm:$0xff]  ;;  %v1925_v36 = vpack.c.bf16 %v504_v31, %v496_v30  ;;  %v503_v38 = vld [vmem:[#allocation6 + $0x440] sm:$0xff]  ;;  %v497_v39 = vld [vmem:[#allocation6 + $0x410] sm:$0xff] }
  0xd1   : > { %v1989_v40 = vpack.c.bf16 %v506_v33, %v498_v32  ;;  %v505_v41 = vld [vmem:[#allocation6 + $0x450] sm:$0xff]  ;;  %v512_v42 = vld [vmem:[#allocation6 + $0x488] sm:$0xff]  ;;  %v514_v44 = vld [vmem:[#allocation6 + $0x498] sm:$0xff]  ;;  %v1927_v46 = vpack.c.bf16 %v503_v38, %v495_v37 }
  0xd2   : > { %1916 = vmatpush1.bf16.msra.mxu0 %v1915_v10  ;;  %v520_v43 = vld [vmem:[#allocation6 + $0x4c8] sm:$0xff]  ;;  %v522_v45 = vld [vmem:[#allocation6 + $0x4d8] sm:$0xff]  ;;  %v1991_v47 = vpack.c.bf16 %v505_v41, %v497_v39  ;;  %v511_v49 = vld [vmem:[#allocation6 + $0x480] sm:$0xff] }
  0xd3   : > { %1980 = vmatpush1.bf16.msra.mxu1 %v1979_v11  ;;  %1918 = vmatprep.subr.bf16.mxu0 %v1917_v12  ;;  %v1929_v48 = vpack.c.bf16 %v520_v43, %v512_v42  ;;  %v519_v50 = vld [vmem:[#allocation6 + $0x4c0] sm:$0xff]  ;;  %v513_v51 = vld [vmem:[#allocation6 + $0x490] sm:$0xff]  ;;  %v1993_v52 = vpack.c.bf16 %v522_v45, %v514_v44  ;;  %v528_v54 = vld [vmem:[#allocation6 + $0x508] sm:$0xff] }
  0xd4   : > { %1982 = vmatprep.subr.bf16.mxu1 %v1981_v16  ;;  %v521_v53 = vld [vmem:[#allocation6 + $0x4d0] sm:$0xff]  ;;  %v536_v55 = vld [vmem:[#allocation6 + $0x548] sm:$0xff]  ;;  %v530_v56 = vld [vmem:[#allocation6 + $0x518] sm:$0xff]  ;;  %v1931_v58 = vpack.c.bf16 %v519_v50, %v511_v49 }
  0xd5   : > { %v538_v57 = vld [vmem:[#allocation6 + $0x558] sm:$0xff]  ;;  %v1995_v59 = vpack.c.bf16 %v521_v53, %v513_v51  ;;  %v1933_v60 = vpack.c.bf16 %v536_v55, %v528_v54  ;;  %v527_v61 = vld [vmem:[#allocation6 + $0x500] sm:$0xff]  ;;  %v529_v63 = vld [vmem:[#allocation6 + $0x510] sm:$0xff] }
  0xd6   : > { %1920 = vmatpush1.bf16.msra.mxu0 %v1919_v22  ;;  %v535_v62 = vld [vmem:[#allocation6 + $0x540] sm:$0xff]  ;;  %v1997_v0 = vpack.c.bf16 %v538_v57, %v530_v56  ;;  %v537_v1 = vld [vmem:[#allocation6 + $0x550] sm:$0xff]  ;;  %v544_v2 = vld [vmem:[#allocation6 + $0x588] sm:$0xff] }
  0xd7   : > { %1984 = vmatpush1.bf16.msra.mxu1 %v1983_v23  ;;  %1922 = vmatprep.subr.bf16.mxu0 %v1921_v24  ;;  %v552_v3 = vld [vmem:[#allocation6 + $0x5c8] sm:$0xff]  ;;  %v546_v4 = vld [vmem:[#allocation6 + $0x598] sm:$0xff]  ;;  %v1935_v6 = vpack.c.bf16 %v535_v62, %v527_v61  ;;  %v543_v7 = vld [vmem:[#allocation6 + $0x580] sm:$0xff]  ;;  %v1999_v8 = vpack.c.bf16 %v537_v1, %v529_v63 }
  0xd8   : > { %1986 = vmatprep.subr.bf16.mxu1 %v1985_v28  ;;  %v554_v5 = vld [vmem:[#allocation6 + $0x5d8] sm:$0xff]  ;;  %v1937_v9 = vpack.c.bf16 %v552_v3, %v544_v2  ;;  %v551_v10 = vld [vmem:[#allocation6 + $0x5c0] sm:$0xff]  ;;  %v545_v11 = vld [vmem:[#allocation6 + $0x590] sm:$0xff] }
  0xd9   : > { %v553_v12 = vld [vmem:[#allocation6 + $0x5d0] sm:$0xff]  ;;  %v2001_v13 = vpack.c.bf16 %v554_v5, %v546_v4  ;;  %v560_v14 = vld [vmem:[#allocation6 + $0x608] sm:$0xff]  ;;  %v562_v17 = vld [vmem:[#allocation6 + $0x618] sm:$0xff]  ;;  %v1939_v19 = vpack.c.bf16 %v551_v10, %v543_v7 }
  0xda   : > { %1924 = vmatpush1.bf16.msra.mxu0 %v1923_v34  ;;  %v568_v15 = vld [vmem:[#allocation6 + $0x648] sm:$0xff]  ;;  %v570_v18 = vld [vmem:[#allocation6 + $0x658] sm:$0xff]  ;;  %v2003_v20 = vpack.c.bf16 %v553_v12, %v545_v11  ;;  %v559_v22 = vld [vmem:[#allocation6 + $0x600] sm:$0xff] }
  0xdb   : > { %1988 = vmatpush1.bf16.msra.mxu1 %v1987_v35  ;;  %1926 = vmatprep.subr.bf16.mxu0 %v1925_v36  ;;  %v2991_v16 = vld [vmem:[%s2972_s10 + $0x8] sm:$0xff]  ;;  %v1941_v21 = vpack.c.bf16 %v568_v15, %v560_v14  ;;  %v567_v23 = vld [vmem:[#allocation6 + $0x640] sm:$0xff]  ;;  %v561_v24 = vld [vmem:[#allocation6 + $0x610] sm:$0xff]  ;;  %v2005_v25 = vpack.c.bf16 %v570_v18, %v562_v17 }
  0xdc   : > { %1990 = vmatprep.subr.bf16.mxu1 %v1989_v40  ;;  %729 = vmatprep.mubr.f32.mxu0 %v2991_v16  ;;  %v569_v26 = vld [vmem:[#allocation6 + $0x650] sm:$0xff]  ;;  %v576_v27 = vld [vmem:[#allocation6 + $0x688] sm:$0xff]  ;;  %v578_v29 = vld [vmem:[#allocation6 + $0x698] sm:$0xff]  ;;  %v1943_v31 = vpack.c.bf16 %v567_v23, %v559_v22 }
  0xdd   : > { %800 = vmatprep.mubr.f32.mxu1 %v2991_v16  ;;  %v584_v28 = vld [vmem:[#allocation6 + $0x6c8] sm:$0xff]  ;;  %v586_v30 = vld [vmem:[#allocation6 + $0x6d8] sm:$0xff]  ;;  %v2007_v32 = vpack.c.bf16 %v569_v26, %v561_v24  ;;  %v575_v34 = vld [vmem:[#allocation6 + $0x680] sm:$0xff] }
  0xde   : > { %1928 = vmatpush1.bf16.msra.mxu0 %v1927_v46  ;;  %v1945_v33 = vpack.c.bf16 %v584_v28, %v576_v27  ;;  %v583_v35 = vld [vmem:[#allocation6 + $0x6c0] sm:$0xff]  ;;  %v577_v36 = vld [vmem:[#allocation6 + $0x690] sm:$0xff]  ;;  %v2009_v37 = vpack.c.bf16 %v586_v30, %v578_v29  ;;  %v592_v39 = vld [vmem:[#allocation6 + $0x708] sm:$0xff] }
  0xdf   : > { %1992 = vmatpush1.bf16.msra.mxu1 %v1991_v47  ;;  %1930 = vmatprep.subr.bf16.mxu0 %v1929_v48  ;;  %v585_v38 = vld [vmem:[#allocation6 + $0x6d0] sm:$0xff]  ;;  %v600_v40 = vld [vmem:[#allocation6 + $0x748] sm:$0xff]  ;;  %v594_v41 = vld [vmem:[#allocation6 + $0x718] sm:$0xff]  ;;  %v1947_v43 = vpack.c.bf16 %v583_v35, %v575_v34 }
  0xe0   : > { %1994 = vmatprep.subr.bf16.mxu1 %v1993_v52  ;;  %v602_v42 = vld [vmem:[#allocation6 + $0x758] sm:$0xff]  ;;  %v2011_v44 = vpack.c.bf16 %v585_v38, %v577_v36  ;;  %v1949_v45 = vpack.c.bf16 %v600_v40, %v592_v39  ;;  %v591_v46 = vld [vmem:[#allocation6 + $0x700] sm:$0xff]  ;;  %v593_v48 = vld [vmem:[#allocation6 + $0x710] sm:$0xff] }
  0xe1   : > { %v599_v47 = vld [vmem:[#allocation6 + $0x740] sm:$0xff]  ;;  %v2013_v49 = vpack.c.bf16 %v602_v42, %v594_v41  ;;  %v601_v50 = vld [vmem:[#allocation6 + $0x750] sm:$0xff]  ;;  %v608_v51 = vld [vmem:[#allocation6 + $0x788] sm:$0xff] }
  0xe2   : > { %1932 = vmatpush1.bf16.msra.mxu0 %v1931_v58  ;;  %v616_v52 = vld [vmem:[#allocation6 + $0x7c8] sm:$0xff]  ;;  %v610_v53 = vld [vmem:[#allocation6 + $0x798] sm:$0xff]  ;;  %v1951_v55 = vpack.c.bf16 %v599_v47, %v591_v46  ;;  %v2015_v56 = vpack.c.bf16 %v601_v50, %v593_v48  ;;  %v607_v58 = vld [vmem:[#allocation6 + $0x780] sm:$0xff] }
  0xe3   : > { %1996 = vmatpush1.bf16.msra.mxu1 %v1995_v59  ;;  %1934 = vmatprep.subr.bf16.mxu0 %v1933_v60  ;;  %v618_v54 = vld [vmem:[#allocation6 + $0x7d8] sm:$0xff]  ;;  %v1953_v57 = vpack.c.bf16 %v616_v52, %v608_v51  ;;  %v615_v59 = vld [vmem:[#allocation6 + $0x7c0] sm:$0xff]  ;;  %v609_v60 = vld [vmem:[#allocation6 + $0x790] sm:$0xff] }
  0xe4   : > { %1998 = vmatprep.subr.bf16.mxu1 %v1997_v0  ;;  %v2017_v61 = vpack.c.bf16 %v618_v54, %v610_v53  ;;  %v617_v62 = vld [vmem:[#allocation6 + $0x7d0] sm:$0xff]  ;;  %v372_v63 = vld [vmem:[#allocation6 + $0x28] sm:$0xff]  ;;  %v374_v1 = vld [vmem:[#allocation6 + $0x38] sm:$0xff]  ;;  %v1955_v3 = vpack.c.bf16 %v615_v59, %v607_v58 }
  0xe5   : > { %v380_v0 = vld [vmem:[#allocation6 + $0x68] sm:$0xff]  ;;  %v382_v2 = vld [vmem:[#allocation6 + $0x78] sm:$0xff]  ;;  %v2019_v4 = vpack.c.bf16 %v617_v62, %v609_v60  ;;  %v379_v7 = vld [vmem:[#allocation6 + $0x60] sm:$0xff] }
  0xe6   : > { %1936 = vmatpush1.bf16.msra.mxu0 %v1935_v6  ;;  %v2021_v5 = vpack.c.bf16 %v380_v0, %v372_v63  ;;  %v371_v6 = vld [vmem:[#allocation6 + $0x20] sm:$0xff]  ;;  %v381_v10 = vld [vmem:[#allocation6 + $0x70] sm:$0xff]  ;;  %v388_v11 = vld [vmem:[#allocation6 + $0xa8] sm:$0xff] }
  0xe7   : > { %2000 = vmatpush1.bf16.msra.mxu1 %v1999_v8  ;;  %1938 = vmatprep.subr.bf16.mxu0 %v1937_v9  ;;  %v373_v8 = vld [vmem:[#allocation6 + $0x30] sm:$0xff]  ;;  %v2085_v9 = vpack.c.bf16 %v382_v2, %v374_v1  ;;  %v396_v12 = vld [vmem:[#allocation6 + $0xe8] sm:$0xff]  ;;  %v398_v14 = vld [vmem:[#allocation6 + $0xf8] sm:$0xff]  ;;  %v2023_v17 = vpack.c.bf16 %v379_v7, %v371_v6 }
  0xe8   : > { %2002 = vmatprep.subr.bf16.mxu1 %v2001_v13  ;;  %v390_v13 = vld [vmem:[#allocation6 + $0xb8] sm:$0xff]  ;;  %v2996_v15 = vld [vmem:[%s2972_s10] sm:$0xff]  ;;  %v2087_v18 = vpack.c.bf16 %v381_v10, %v373_v8  ;;  %v412_v26 = vld [vmem:[#allocation6 + $0x168] sm:$0xff] }
  0xe9   : > { %v389_v22 = vld [vmem:[#allocation6 + $0xb0] sm:$0xff]  ;;  %v2089_v23 = vpack.c.bf16 %v398_v14, %v390_v13  ;;  %v406_v27 = vld [vmem:[#allocation6 + $0x138] sm:$0xff]  ;;  %v428_v38 = vld [vmem:[#allocation6 + $0x1e8] sm:$0xff] }
  0xea   : > { %1940 = vmatpush1.bf16.msra.mxu0 %v1939_v19  ;;  %v2025_v19 = vpack.c.bf16 %v396_v12, %v388_v11  ;;  %v397_v24 = vld [vmem:[#allocation6 + $0xf0] sm:$0xff]  ;;  %v414_v28 = vld [vmem:[#allocation6 + $0x178] sm:$0xff]  ;;  %v444_v50 = vld [vmem:[#allocation6 + $0x268] sm:$0xff] }
  0xeb   : > { %2004 = vmatpush1.bf16.msra.mxu1 %v2003_v20  ;;  %1942 = vmatprep.subr.bf16.mxu0 %v1941_v21  ;;  %v387_v20 = vld [vmem:[#allocation6 + $0xa0] sm:$0xff]  ;;  %v2091_v30 = vpack.c.bf16 %v397_v24, %v389_v22  ;;  %v405_v34 = vld [vmem:[#allocation6 + $0x130] sm:$0xff]  ;;  %v2093_v35 = vpack.c.bf16 %v414_v28, %v406_v27  ;;  %v422_v39 = vld [vmem:[#allocation6 + $0x1b8] sm:$0xff] }
  0xec   : > { %2006 = vmatprep.subr.bf16.mxu1 %v2005_v25  ;;  %v395_v21 = vld [vmem:[#allocation6 + $0xe0] sm:$0xff]  ;;  %v404_v25 = vld [vmem:[#allocation6 + $0x128] sm:$0xff]  ;;  %v413_v36 = vld [vmem:[#allocation6 + $0x170] sm:$0xff] }
  0xed   : > { %v2027_v29 = vpack.c.bf16 %v395_v21, %v387_v20  ;;  %v430_v40 = vld [vmem:[#allocation6 + $0x1f8] sm:$0xff]  ;;  %v2095_v42 = vpack.c.bf16 %v413_v36, %v405_v34  ;;  %v421_v46 = vld [vmem:[#allocation6 + $0x1b0] sm:$0xff]  ;;  %v452_v60 = vld [vmem:[#allocation6 + $0x2a8] sm:$0xff] }
  0xee   : > { %1944 = vmatpush1.bf16.msra.mxu0 %v1943_v31  ;;  %v2029_v31 = vpack.c.bf16 %v412_v26, %v404_v25  ;;  %v2097_v47 = vpack.c.bf16 %v430_v40, %v422_v39  ;;  %v429_v48 = vld [vmem:[#allocation6 + $0x1f0] sm:$0xff]  ;;  %v438_v51 = vld [vmem:[#allocation6 + $0x238] sm:$0xff]  ;;  %v468_v8 = vld [vmem:[#allocation6 + $0x328] sm:$0xff] }
  0xef   : > { %2008 = vmatpush1.bf16.msra.mxu1 %v2007_v32  ;;  %1946 = vmatprep.subr.bf16.mxu0 %v1945_v33  ;;  %v403_v32 = vld [vmem:[#allocation6 + $0x120] sm:$0xff]  ;;  %v446_v52 = vld [vmem:[#allocation6 + $0x278] sm:$0xff]  ;;  %v445_v59 = vld [vmem:[#allocation6 + $0x270] sm:$0xff] }
  0xf0   : > { %2010 = vmatprep.subr.bf16.mxu1 %v2009_v37  ;;  %v411_v33 = vld [vmem:[#allocation6 + $0x160] sm:$0xff]  ;;  %v420_v37 = vld [vmem:[#allocation6 + $0x1a8] sm:$0xff]  ;;  %v2101_v58 = vpack.c.bf16 %v446_v52, %v438_v51  ;;  %v454_v62 = vld [vmem:[#allocation6 + $0x2b8] sm:$0xff] }
  0xf1   : > { %v2031_v41 = vpack.c.bf16 %v411_v33, %v403_v32  ;;  %v462_v63 = vld [vmem:[#allocation6 + $0x2f8] sm:$0xff]  ;;  %v461_v7 = vld [vmem:[#allocation6 + $0x2f0] sm:$0xff]  ;;  %v484_v22 = vld [vmem:[#allocation6 + $0x3a8] sm:$0xff] }
  0xf2   : > { %1948 = vmatpush1.bf16.msra.mxu0 %v1947_v43  ;;  %v2033_v43 = vpack.c.bf16 %v428_v38, %v420_v37  ;;  %v2105_v6 = vpack.c.bf16 %v462_v63, %v454_v62  ;;  %v470_v10 = vld [vmem:[#allocation6 + $0x338] sm:$0xff]  ;;  %v477_v21 = vld [vmem:[#allocation6 + $0x370] sm:$0xff]  ;;  %v500_v34 = vld [vmem:[#allocation6 + $0x428] sm:$0xff] }
  0xf3   : > { %2012 = vmatpush1.bf16.msra.mxu1 %v2011_v44  ;;  %1950 = vmatprep.subr.bf16.mxu0 %v1949_v45  ;;  %v419_v44 = vld [vmem:[#allocation6 + $0x1a0] sm:$0xff]  ;;  %v478_v11 = vld [vmem:[#allocation6 + $0x378] sm:$0xff]  ;;  %v493_v33 = vld [vmem:[#allocation6 + $0x3f0] sm:$0xff] }
  0xf4   : > { %2014 = vmatprep.subr.bf16.mxu1 %v2013_v49  ;;  %v427_v45 = vld [vmem:[#allocation6 + $0x1e0] sm:$0xff]  ;;  %v436_v49 = vld [vmem:[#allocation6 + $0x228] sm:$0xff]  ;;  %v2109_v20 = vpack.c.bf16 %v478_v11, %v470_v10  ;;  %v486_v24 = vld [vmem:[#allocation6 + $0x3b8] sm:$0xff] }
  0xf5   : > { %v2035_v53 = vpack.c.bf16 %v427_v45, %v419_v44  ;;  %v2037_v54 = vpack.c.bf16 %v444_v50, %v436_v49  ;;  %v494_v25 = vld [vmem:[#allocation6 + $0x3f8] sm:$0xff]  ;;  %v509_v45 = vld [vmem:[#allocation6 + $0x470] sm:$0xff] }
  0xf6   : > { %1952 = vmatpush1.bf16.msra.mxu0 %v1951_v55  ;;  %v435_v55 = vld [vmem:[#allocation6 + $0x220] sm:$0xff]  ;;  %v2113_v32 = vpack.c.bf16 %v494_v25, %v486_v24  ;;  %v502_v36 = vld [vmem:[#allocation6 + $0x438] sm:$0xff] }
  0xf7   : > { %2016 = vmatpush1.bf16.msra.mxu1 %v2015_v56  ;;  %1954 = vmatprep.subr.bf16.mxu0 %v1953_v57  ;;  %v443_v56 = vld [vmem:[#allocation6 + $0x260] sm:$0xff]  ;;  %v437_v57 = vld [vmem:[#allocation6 + $0x230] sm:$0xff]  ;;  %v510_v37 = vld [vmem:[#allocation6 + $0x478] sm:$0xff] }
  0xf8   : > { %2018 = vmatprep.subr.bf16.mxu1 %v2017_v61  ;;  %v460_v61 = vld [vmem:[#allocation6 + $0x2e8] sm:$0xff]  ;;  %v2039_v0 = vpack.c.bf16 %v443_v56, %v435_v55  ;;  %v2103_v1 = vpack.c.bf16 %v445_v59, %v437_v57  ;;  %v2117_v44 = vpack.c.bf16 %v510_v37, %v502_v36  ;;  %v526_v49 = vld [vmem:[#allocation6 + $0x4f8] sm:$0xff]  ;;  %v525_v56 = vld [vmem:[#allocation6 + $0x4f0] sm:$0xff] }
  0xf9   : > { %v2041_v2 = vpack.c.bf16 %v460_v61, %v452_v60  ;;  %v532_v57 = vld [vmem:[#allocation6 + $0x528] sm:$0xff]  ;;  %v534_v59 = vld [vmem:[#allocation6 + $0x538] sm:$0xff] }
  0xfa   : > { %1956 = vmatpush1.bf16.msra.mxu0 %v1955_v3  ;;  %v451_v3 = vld [vmem:[#allocation6 + $0x2a0] sm:$0xff]  ;;  %v542_v60 = vld [vmem:[#allocation6 + $0x578] sm:$0xff] }
  0xfb   : > { %2020 = vmatpush1.bf16.msra.mxu1 %v2019_v4  ;;  %2022 = vmatprep.subr.bf16.mxu0 %v2021_v5  ;;  %v459_v4 = vld [vmem:[#allocation6 + $0x2e0] sm:$0xff]  ;;  %v453_v5 = vld [vmem:[#allocation6 + $0x2b0] sm:$0xff] }
  0xfc   : > { %2086 = vmatprep.subr.bf16.mxu1 %v2085_v9  ;;  %v476_v9 = vld [vmem:[#allocation6 + $0x368] sm:$0xff]  ;;  %v2043_v12 = vpack.c.bf16 %v459_v4, %v451_v3  ;;  %v2107_v13 = vpack.c.bf16 %v461_v7, %v453_v5  ;;  %v2125_v3 = vpack.c.bf16 %v542_v60, %v534_v59  ;;  %v541_v4 = vld [vmem:[#allocation6 + $0x570] sm:$0xff]  ;;  %v550_v7 = vld [vmem:[#allocation6 + $0x5b8] sm:$0xff] }
  0xfd   : > { %730 = vmatmul.mubr.f32.vlgmr.msra.gmra.mrb[0].mxu0 %v2996_v15  ;;  %v2045_v14 = vpack.c.bf16 %v476_v9, %v468_v8  ;;  %v548_v5 = vld [vmem:[#allocation6 + $0x5a8] sm:$0xff]  ;;  %v558_v8 = vld [vmem:[#allocation6 + $0x5f8] sm:$0xff] }
  0xfe   : > { %801 = vmatmul.mubr.f32.vlgmr.msra.gmra.mrb[0].mxu1 %v2996_v15  ;;  %2024 = vmatpush1.bf16.msra.mxu0 %v2023_v17  ;;  %v467_v17 = vld [vmem:[#allocation6 + $0x320] sm:$0xff] }
  0xff   : > { %2088 = vmatpush1.bf16.msra.mxu1 %v2087_v18  ;;  %2026 = vmatprep.subr.bf16.mxu0 %v2025_v19  ;;  %v475_v18 = vld [vmem:[#allocation6 + $0x360] sm:$0xff]  ;;  %v469_v19 = vld [vmem:[#allocation6 + $0x330] sm:$0xff] }
 0x100   : > { %2090 = vmatprep.subr.bf16.mxu1 %v2089_v23  ;;  %871 = vmatprep.mubr.f32.mxu0 %v2991_v16  ;;  %v492_v23 = vld [vmem:[#allocation6 + $0x3e8] sm:$0xff]  ;;  %v2047_v26 = vpack.c.bf16 %v475_v18, %v467_v17  ;;  %v2111_v27 = vpack.c.bf16 %v477_v21, %v469_v19  ;;  %v2129_v17 = vpack.c.bf16 %v558_v8, %v550_v7  ;;  %v557_v18 = vld [vmem:[#allocation6 + $0x5f0] sm:$0xff]  ;;  %v566_v21 = vld [vmem:[#allocation6 + $0x638] sm:$0xff] }
 0x101   : > { %942 = vmatprep.mubr.f32.mxu1 %v2991_v16  ;;  %v2099_v16 = vpack.c.bf16 %v429_v48, %v421_v46  ;;  %v2049_v28 = vpack.c.bf16 %v492_v23, %v484_v22  ;;  %v516_v46 = vld [vmem:[#allocation6 + $0x4a8] sm:$0xff]  ;;  %v518_v48 = vld [vmem:[#allocation6 + $0x4b8] sm:$0xff] }
 0x102   : > { %2028 = vmatpush1.bf16.msra.mxu0 %v2027_v29  ;;  %v483_v29 = vld [vmem:[#allocation6 + $0x3a0] sm:$0xff]  ;;  %v2121_v55 = vpack.c.bf16 %v526_v49, %v518_v48  ;;  %v564_v19 = vld [vmem:[#allocation6 + $0x628] sm:$0xff]  ;;  %v574_v22 = vld [vmem:[#allocation6 + $0x678] sm:$0xff] }
 0x103   : > { %2092 = vmatpush1.bf16.msra.mxu1 %v2091_v30  ;;  %2030 = vmatprep.subr.bf16.mxu0 %v2029_v31  ;;  %v491_v30 = vld [vmem:[#allocation6 + $0x3e0] sm:$0xff]  ;;  %v485_v31 = vld [vmem:[#allocation6 + $0x3b0] sm:$0xff] }
 0x104   : > { %2094 = vmatprep.subr.bf16.mxu1 %v2093_v35  ;;  %v508_v35 = vld [vmem:[#allocation6 + $0x468] sm:$0xff]  ;;  %v2051_v38 = vpack.c.bf16 %v491_v30, %v483_v29  ;;  %v2115_v39 = vpack.c.bf16 %v493_v33, %v485_v31  ;;  %v2133_v29 = vpack.c.bf16 %v574_v22, %v566_v21  ;;  %v573_v30 = vld [vmem:[#allocation6 + $0x670] sm:$0xff]  ;;  %v582_v33 = vld [vmem:[#allocation6 + $0x6b8] sm:$0xff] }
 0x105   : > { %v2053_v40 = vpack.c.bf16 %v508_v35, %v500_v34  ;;  %v580_v31 = vld [vmem:[#allocation6 + $0x6a8] sm:$0xff]  ;;  %v590_v34 = vld [vmem:[#allocation6 + $0x6f8] sm:$0xff] }
 0x106   : > { %2032 = vmatpush1.bf16.msra.mxu0 %v2031_v41  ;;  %v499_v41 = vld [vmem:[#allocation6 + $0x420] sm:$0xff] }
 0x107   : > { %2096 = vmatpush1.bf16.msra.mxu1 %v2095_v42  ;;  %2034 = vmatprep.subr.bf16.mxu0 %v2033_v43  ;;  %v507_v42 = vld [vmem:[#allocation6 + $0x460] sm:$0xff]  ;;  %v501_v43 = vld [vmem:[#allocation6 + $0x430] sm:$0xff] }
 0x108   : > { %2098 = vmatprep.subr.bf16.mxu1 %v2097_v47  ;;  %v524_v47 = vld [vmem:[#allocation6 + $0x4e8] sm:$0xff]  ;;  %v2055_v50 = vpack.c.bf16 %v507_v42, %v499_v41  ;;  %v2119_v51 = vpack.c.bf16 %v509_v45, %v501_v43  ;;  %v2137_v41 = vpack.c.bf16 %v590_v34, %v582_v33  ;;  %v589_v42 = vld [vmem:[#allocation6 + $0x6f0] sm:$0xff]  ;;  %v598_v45 = vld [vmem:[#allocation6 + $0x738] sm:$0xff] }
 0x109   : > { %v2057_v52 = vpack.c.bf16 %v524_v47, %v516_v46  ;;  %v596_v43 = vld [vmem:[#allocation6 + $0x728] sm:$0xff]  ;;  %v606_v46 = vld [vmem:[#allocation6 + $0x778] sm:$0xff] }
 0x10a   : > { %2036 = vmatpush1.bf16.msra.mxu0 %v2035_v53  ;;  %v515_v53 = vld [vmem:[#allocation6 + $0x4a0] sm:$0xff] }
 0x10b   : > { %2100 = vmatpush1.bf16.msra.mxu1 %v2099_v16  ;;  %2038 = vmatprep.subr.bf16.mxu0 %v2037_v54  ;;  %v523_v16 = vld [vmem:[#allocation6 + $0x4e0] sm:$0xff]  ;;  %v517_v54 = vld [vmem:[#allocation6 + $0x4b0] sm:$0xff] }
 0x10c   : > { %2102 = vmatprep.subr.bf16.mxu1 %v2101_v58  ;;  %v540_v58 = vld [vmem:[#allocation6 + $0x568] sm:$0xff]  ;;  %v2059_v61 = vpack.c.bf16 %v523_v16, %v515_v53  ;;  %v2123_v62 = vpack.c.bf16 %v525_v56, %v517_v54  ;;  %v2141_v53 = vpack.c.bf16 %v606_v46, %v598_v45  ;;  %v605_v16 = vld [vmem:[#allocation6 + $0x770] sm:$0xff]  ;;  %v614_v56 = vld [vmem:[#allocation6 + $0x7b8] sm:$0xff] }
 0x10d   : > { %v2061_v63 = vpack.c.bf16 %v540_v58, %v532_v57  ;;  %v612_v54 = vld [vmem:[#allocation6 + $0x7a8] sm:$0xff]  ;;  %v622_v57 = vld [vmem:[#allocation6 + $0x7f8] sm:$0xff] }
 0x10e   : > { %2040 = vmatpush1.bf16.msra.mxu0 %v2039_v0  ;;  %v531_v0 = vld [vmem:[#allocation6 + $0x520] sm:$0xff]  ;;  %v963_v46 = vld [vmem:[#allocation9 + $0x30] sm:$0xff] }
 0x10f   : > { %2104 = vmatpush1.bf16.msra.mxu1 %v2103_v1  ;;  %2042 = vmatprep.subr.bf16.mxu0 %v2041_v2  ;;  %v539_v1 = vld [vmem:[#allocation6 + $0x560] sm:$0xff]  ;;  %v533_v2 = vld [vmem:[#allocation6 + $0x530] sm:$0xff] }
 0x110   : > { %2106 = vmatprep.subr.bf16.mxu1 %v2105_v6  ;;  %v556_v6 = vld [vmem:[#allocation6 + $0x5e8] sm:$0xff]  ;;  %v2063_v9 = vpack.c.bf16 %v539_v1, %v531_v0  ;;  %v2127_v10 = vpack.c.bf16 %v541_v4, %v533_v2  ;;  %v2145_v0 = vpack.c.bf16 %v622_v57, %v614_v56  ;;  %v621_v1 = vld [vmem:[#allocation6 + $0x7f0] sm:$0xff] }
 0x111   : > { %v2065_v11 = vpack.c.bf16 %v556_v6, %v548_v5  ;;  %v973_v2 = vld [vmem:[#allocation9 + $0x80] sm:$0xff]  ;;  %v1006_v5 = vld [vmem:[#allocation9 + $0x188] sm:$0xff] }
 0x112   : > { %2044 = vmatpush1.bf16.msra.mxu0 %v2043_v12  ;;  %v547_v12 = vld [vmem:[#allocation6 + $0x5a0] sm:$0xff]  ;;  %v1005_v4 = vld [vmem:[#allocation9 + $0x180] sm:$0xff]  ;;  %v1014_v56 = vld [vmem:[#allocation9 + $0x1c8] sm:$0xff] }
 0x113   : > { %2108 = vmatpush1.bf16.msra.mxu1 %v2107_v13  ;;  %2046 = vmatprep.subr.bf16.mxu0 %v2045_v14  ;;  %v555_v13 = vld [vmem:[#allocation6 + $0x5e0] sm:$0xff]  ;;  %v549_v14 = vld [vmem:[#allocation6 + $0x5b0] sm:$0xff] }
 0x114   : > { %2110 = vmatprep.subr.bf16.mxu1 %v2109_v20  ;;  %v572_v20 = vld [vmem:[#allocation6 + $0x668] sm:$0xff]  ;;  %v2067_v23 = vpack.c.bf16 %v555_v13, %v547_v12  ;;  %v2131_v24 = vpack.c.bf16 %v557_v18, %v549_v14  ;;  %v2181_v12 = vpack.c.bf16 %v1006_v5, %v1005_v4  ;;  %v990_v13 = vld [vmem:[#allocation9 + $0x108] sm:$0xff]  ;;  %v975_v14 = vld [vmem:[#allocation9 + $0x90] sm:$0xff] }
 0x115   : > { %v2069_v25 = vpack.c.bf16 %v572_v20, %v564_v19  ;;  %v1007_v18 = vld [vmem:[#allocation9 + $0x190] sm:$0xff]  ;;  %v1008_v19 = vld [vmem:[#allocation9 + $0x198] sm:$0xff] }
 0x116   : > { %2048 = vmatpush1.bf16.msra.mxu0 %v2047_v26  ;;  %v563_v26 = vld [vmem:[#allocation6 + $0x620] sm:$0xff]  ;;  %v967_v5 = vld [vmem:[#allocation9 + $0x50] sm:$0xff] }
 0x117   : > { %2112 = vmatpush1.bf16.msra.mxu1 %v2111_v27  ;;  %2050 = vmatprep.subr.bf16.mxu0 %v2049_v28  ;;  %v571_v27 = vld [vmem:[#allocation6 + $0x660] sm:$0xff]  ;;  %v565_v28 = vld [vmem:[#allocation6 + $0x630] sm:$0xff] }
 0x118   : > { %2114 = vmatprep.subr.bf16.mxu1 %v2113_v32  ;;  %v588_v32 = vld [vmem:[#allocation6 + $0x6e8] sm:$0xff]  ;;  %v2071_v35 = vpack.c.bf16 %v571_v27, %v563_v26  ;;  %v2135_v36 = vpack.c.bf16 %v573_v30, %v565_v28  ;;  %v2185_v26 = vpack.c.bf16 %v1008_v19, %v1007_v18  ;;  %v992_v27 = vld [vmem:[#allocation9 + $0x118] sm:$0xff]  ;;  %v1018_v18 = vld [vmem:[#allocation9 + $0x1e8] sm:$0xff] }
 0x119   : > { %v2073_v37 = vpack.c.bf16 %v588_v32, %v580_v31  ;;  %v977_v28 = vld [vmem:[#allocation9 + $0xa0] sm:$0xff]  ;;  %v1010_v31 = vld [vmem:[#allocation9 + $0x1a8] sm:$0xff]  ;;  %v1016_v4 = vld [vmem:[#allocation9 + $0x1d8] sm:$0xff] }
 0x11a   : > { %2052 = vmatpush1.bf16.msra.mxu0 %v2051_v38  ;;  %v579_v38 = vld [vmem:[#allocation6 + $0x6a0] sm:$0xff]  ;;  %v1009_v30 = vld [vmem:[#allocation9 + $0x1a0] sm:$0xff] }
 0x11b   : > { %2116 = vmatpush1.bf16.msra.mxu1 %v2115_v39  ;;  %2054 = vmatprep.subr.bf16.mxu0 %v2053_v40  ;;  %v587_v39 = vld [vmem:[#allocation6 + $0x6e0] sm:$0xff]  ;;  %v581_v40 = vld [vmem:[#allocation6 + $0x6b0] sm:$0xff]  ;;  %v969_v19 = vld [vmem:[#allocation9 + $0x60] sm:$0xff] }
 0x11c   : > { %2118 = vmatprep.subr.bf16.mxu1 %v2117_v44  ;;  %v604_v44 = vld [vmem:[#allocation6 + $0x768] sm:$0xff]  ;;  %v2075_v47 = vpack.c.bf16 %v587_v39, %v579_v38  ;;  %v2139_v48 = vpack.c.bf16 %v589_v42, %v581_v40  ;;  %v2189_v38 = vpack.c.bf16 %v1010_v31, %v1009_v30  ;;  %v994_v39 = vld [vmem:[#allocation9 + $0x128] sm:$0xff]  ;;  %v979_v40 = vld [vmem:[#allocation9 + $0xb0] sm:$0xff] }
 0x11d   : > { %v2077_v49 = vpack.c.bf16 %v604_v44, %v596_v43  ;;  %v1011_v42 = vld [vmem:[#allocation9 + $0x1b0] sm:$0xff]  ;;  %v1012_v43 = vld [vmem:[#allocation9 + $0x1b8] sm:$0xff] }
 0x11e   : > { %2056 = vmatpush1.bf16.msra.mxu0 %v2055_v50  ;;  %v595_v50 = vld [vmem:[#allocation6 + $0x720] sm:$0xff] }
 0x11f   : > { %2120 = vmatpush1.bf16.msra.mxu1 %v2119_v51  ;;  %2058 = vmatprep.subr.bf16.mxu0 %v2057_v52  ;;  %v603_v51 = vld [vmem:[#allocation6 + $0x760] sm:$0xff]  ;;  %v597_v52 = vld [vmem:[#allocation6 + $0x730] sm:$0xff] }
 0x120   : > { %2122 = vmatprep.subr.bf16.mxu1 %v2121_v55  ;;  %v620_v55 = vld [vmem:[#allocation6 + $0x7e8] sm:$0xff]  ;;  %v2079_v58 = vpack.c.bf16 %v603_v51, %v595_v50  ;;  %v2143_v59 = vpack.c.bf16 %v605_v16, %v597_v52  ;;  %v996_v50 = vld [vmem:[#allocation9 + $0x138] sm:$0xff]  ;;  %v982_v16 = vld [vmem:[#allocation9 + $0xc8] sm:$0xff] }
 0x121   : > { %v2081_v60 = vpack.c.bf16 %v620_v55, %v612_v54  ;;  %v1013_v54 = vld [vmem:[#allocation9 + $0x1c0] sm:$0xff] }
 0x122   : > { %2060 = vmatpush1.bf16.msra.mxu0 %v2059_v61  ;;  %v611_v61 = vld [vmem:[#allocation6 + $0x7a0] sm:$0xff]  ;;  %v2197_v57 = vpack.c.bf16 %v1014_v56, %v1013_v54 }
 0x123   : > { %2124 = vmatpush1.bf16.msra.mxu1 %v2123_v62  ;;  %2062 = vmatprep.subr.bf16.mxu0 %v2061_v63  ;;  %v619_v62 = vld [vmem:[#allocation6 + $0x7e0] sm:$0xff]  ;;  %v613_v63 = vld [vmem:[#allocation6 + $0x7b0] sm:$0xff] }
 0x124   : > { %2126 = vmatprep.subr.bf16.mxu1 %v2125_v3  ;;  %v974_v3 = vld [vmem:[#allocation9 + $0x88] sm:$0xff]  ;;  %v2083_v6 = vpack.c.bf16 %v619_v62, %v611_v61  ;;  %v2147_v7 = vpack.c.bf16 %v621_v1, %v613_v63  ;;  %v984_v1 = vld [vmem:[#allocation9 + $0xd8] sm:$0xff] }
 0x125   : > { %v2149_v8 = vpack.c.bf16 %v974_v3, %v973_v2  ;;  %v998_v62 = vld [vmem:[#allocation9 + $0x148] sm:$0xff]  ;;  %v1015_v2 = vld [vmem:[#allocation9 + $0x1d0] sm:$0xff] }
 0x126   : > { %2064 = vmatpush1.bf16.msra.mxu0 %v2063_v9  ;;  %v957_v9 = vld [vmem:[#allocation9] sm:$0xff] }
 0x127   : > { %2128 = vmatpush1.bf16.msra.mxu1 %v2127_v10  ;;  %2066 = vmatprep.subr.bf16.mxu0 %v2065_v11  ;;  %v958_v10 = vld [vmem:[#allocation9 + $0x8] sm:$0xff]  ;;  %v989_v11 = vld [vmem:[#allocation9 + $0x100] sm:$0xff] }
 0x128   : > { %2130 = vmatprep.subr.bf16.mxu1 %v2129_v17  ;;  %v976_v17 = vld [vmem:[#allocation9 + $0x98] sm:$0xff]  ;;  %v2151_v20 = vpack.c.bf16 %v958_v10, %v957_v9  ;;  %v2183_v21 = vpack.c.bf16 %v990_v13, %v989_v11  ;;  %v999_v9 = vld [vmem:[#allocation9 + $0x150] sm:$0xff]  ;;  %v986_v13 = vld [vmem:[#allocation9 + $0xe8] sm:$0xff] }
 0x129   : > { %v2153_v22 = vpack.c.bf16 %v976_v17, %v975_v14  ;;  %v1000_v10 = vld [vmem:[#allocation9 + $0x158] sm:$0xff]  ;;  %v1017_v14 = vld [vmem:[#allocation9 + $0x1e0] sm:$0xff] }
 0x12a   : > { %2068 = vmatpush1.bf16.msra.mxu0 %v2067_v23  ;;  %v959_v23 = vld [vmem:[#allocation9 + $0x10] sm:$0xff]  ;;  %v2203_v11 = vpack.c.bf16 %v1000_v10, %v999_v9 }
 0x12b   : > { %2132 = vmatpush1.bf16.msra.mxu1 %v2131_v24  ;;  %2070 = vmatprep.subr.bf16.mxu0 %v2069_v25  ;;  %v960_v24 = vld [vmem:[#allocation9 + $0x18] sm:$0xff]  ;;  %v991_v25 = vld [vmem:[#allocation9 + $0x110] sm:$0xff] }
 0x12c   : > { %2134 = vmatprep.subr.bf16.mxu1 %v2133_v29  ;;  %v978_v29 = vld [vmem:[#allocation9 + $0xa8] sm:$0xff]  ;;  %v2155_v32 = vpack.c.bf16 %v960_v24, %v959_v23  ;;  %v2187_v33 = vpack.c.bf16 %v992_v27, %v991_v25  ;;  %v1001_v23 = vld [vmem:[#allocation9 + $0x160] sm:$0xff]  ;;  %v987_v25 = vld [vmem:[#allocation9 + $0xf0] sm:$0xff] }
 0x12d   : > { %v2157_v34 = vpack.c.bf16 %v978_v29, %v977_v28  ;;  %v1002_v24 = vld [vmem:[#allocation9 + $0x168] sm:$0xff]  ;;  %v988_v27 = vld [vmem:[#allocation9 + $0xf8] sm:$0xff]  ;;  %v1019_v28 = vld [vmem:[#allocation9 + $0x1f0] sm:$0xff] }
 0x12e   : > { %2072 = vmatpush1.bf16.msra.mxu0 %v2071_v35  ;;  %v961_v35 = vld [vmem:[#allocation9 + $0x20] sm:$0xff]  ;;  %v1020_v29 = vld [vmem:[#allocation9 + $0x1f8] sm:$0xff]  ;;  %v2177_v30 = vpack.c.bf16 %v988_v27, %v987_v25  ;;  %v1026_v27 = vld [vmem:[#allocation9 + $0x228] sm:$0xff] }
 0x12f   : > { %2136 = vmatpush1.bf16.msra.mxu1 %v2135_v36  ;;  %2074 = vmatprep.subr.bf16.mxu0 %v2073_v37  ;;  %v962_v36 = vld [vmem:[#allocation9 + $0x28] sm:$0xff]  ;;  %v993_v37 = vld [vmem:[#allocation9 + $0x120] sm:$0xff]  ;;  %v2209_v31 = vpack.c.bf16 %v1020_v29, %v1019_v28 }
 0x130   : > { %2138 = vmatprep.subr.bf16.mxu1 %v2137_v41  ;;  %v980_v41 = vld [vmem:[#allocation9 + $0xb8] sm:$0xff]  ;;  %v2159_v44 = vpack.c.bf16 %v962_v36, %v961_v35  ;;  %v1057_v28 = vld [vmem:[#allocation9 + $0x320] sm:$0xff] }
 0x131   : > { %v2161_v45 = vpack.c.bf16 %v980_v41, %v979_v40  ;;  %v1004_v36 = vld [vmem:[#allocation9 + $0x178] sm:$0xff]  ;;  %v1069_v40 = vld [vmem:[#allocation9 + $0x380] sm:$0xff] }
 0x132   : > { %2076 = vmatpush1.bf16.msra.mxu0 %v2075_v47  ;;  %v964_v47 = vld [vmem:[#allocation9 + $0x38] sm:$0xff] }
 0x133   : > { %2140 = vmatpush1.bf16.msra.mxu1 %v2139_v48  ;;  %2078 = vmatprep.subr.bf16.mxu0 %v2077_v49  ;;  %v2193_v48 = vpack.c.bf16 %v1012_v43, %v1011_v42  ;;  %v995_v49 = vld [vmem:[#allocation9 + $0x130] sm:$0xff]  ;;  %v2163_v51 = vpack.c.bf16 %v964_v47, %v963_v46  ;;  %v1070_v42 = vld [vmem:[#allocation9 + $0x388] sm:$0xff]  ;;  %v3007_v46 = vld [vmem:[#allocation8] sm:$0xff] }
 0x134   : > { %2142 = vmatprep.subr.bf16.mxu1 %v2141_v53  ;;  %v2195_v52 = vpack.c.bf16 %v996_v50, %v995_v49  ;;  %v981_v53 = vld [vmem:[#allocation9 + $0xc0] sm:$0xff]  ;;  %v2245_v43 = vpack.c.bf16 %v1070_v42, %v1069_v40  ;;  %v1059_v40 = vld [vmem:[#allocation9 + $0x330] sm:$0xff]  ;;  %v1060_v42 = vld [vmem:[#allocation9 + $0x338] sm:$0xff] }
 0x135   : > { %v2165_v55 = vpack.c.bf16 %v982_v16, %v981_v53 }
 0x136   : > { %2080 = vmatpush1.bf16.msra.mxu0 %v2079_v58  ;;  %v965_v58 = vld [vmem:[#allocation9 + $0x40] sm:$0xff] }
 0x137   : > { %2144 = vmatpush1.bf16.msra.mxu1 %v2143_v59  ;;  %2082 = vmatprep.subr.bf16.mxu0 %v2081_v60  ;;  %v966_v59 = vld [vmem:[#allocation9 + $0x48] sm:$0xff]  ;;  %v997_v60 = vld [vmem:[#allocation9 + $0x140] sm:$0xff] }
 0x138   : > { %2146 = vmatprep.subr.bf16.mxu1 %v2145_v0  ;;  %v2167_v61 = vpack.c.bf16 %v966_v59, %v965_v58  ;;  %v2199_v63 = vpack.c.bf16 %v998_v62, %v997_v60  ;;  %v983_v0 = vld [vmem:[#allocation9 + $0xd0] sm:$0xff]  ;;  %v1022_v62 = vld [vmem:[#allocation9 + $0x208] sm:$0xff] }
 0x139   : > { %v2169_v3 = vpack.c.bf16 %v984_v1, %v983_v0  ;;  %v1054_v0 = vld [vmem:[#allocation9 + $0x308] sm:$0xff]  ;;  %v1039_v1 = vld [vmem:[#allocation9 + $0x290] sm:$0xff] }
 0x13a   : > { %2084 = vmatpush1.bf16.msra.mxu0 %v2083_v6  ;;  %v968_v6 = vld [vmem:[#allocation9 + $0x58] sm:$0xff] }
 0x13b   : > { %2148 = vmatpush1.bf16.msra.mxu1 %v2147_v7  ;;  %2150 = vmatprep.subr.bf16.mxu0 %v2149_v8  ;;  %v2201_v7 = vpack.c.bf16 %v1016_v4, %v1015_v2  ;;  %v2171_v8 = vpack.c.bf16 %v968_v6, %v967_v5  ;;  %v1040_v2 = vld [vmem:[#allocation9 + $0x298] sm:$0xff]  ;;  %v1071_v4 = vld [vmem:[#allocation9 + $0x390] sm:$0xff] }
 0x13c   : > { %2182 = vmatprep.subr.bf16.mxu1 %v2181_v12  ;;  %v985_v12 = vld [vmem:[#allocation9 + $0xe0] sm:$0xff]  ;;  %v1072_v5 = vld [vmem:[#allocation9 + $0x398] sm:$0xff]  ;;  %v2217_v10 = vpack.c.bf16 %v1040_v2, %v1039_v1 }
 0x13d   : > { %872 = vmatmul.mubr.f32.vlgmr.msra.gmra.mrb[2].mxu0 %v2996_v15  ;;  %v2173_v17 = vpack.c.bf16 %v986_v13, %v985_v12  ;;  %v1024_v12 = vld [vmem:[#allocation9 + $0x218] sm:$0xff]  ;;  %v1055_v13 = vld [vmem:[#allocation9 + $0x310] sm:$0xff] }
 0x13e   : > { %943 = vmatmul.mubr.f32.vlgmr.msra.gmra.mrb[2].mxu1 %v2996_v15  ;;  %2152 = vmatpush3.bf16.msra.mxu0 %v2151_v20  ;;  %v2191_v15 = vpack.c.bf16 %v994_v39, %v993_v37  ;;  %v970_v20 = vld [vmem:[#allocation9 + $0x68] sm:$0xff]  ;;  %v1064_v2 = vld [vmem:[#allocation9 + $0x358] sm:$0xff] }
 0x13f   : > { %2184 = vmatpush3.bf16.msra.mxu1 %v2183_v21  ;;  %2154 = vmatprep.subr.bf16.mxu0 %v2153_v22  ;;  %v2205_v21 = vpack.c.bf16 %v1018_v18, %v1017_v14  ;;  %v2175_v22 = vpack.c.bf16 %v970_v20, %v969_v19  ;;  %v1038_v39 = vld [vmem:[#allocation9 + $0x288] sm:$0xff]  ;;  %v1056_v18 = vld [vmem:[#allocation9 + $0x318] sm:$0xff]  ;;  %v1041_v19 = vld [vmem:[#allocation9 + $0x2a0] sm:$0xff] }
 0x140   : > { %2186 = vmatprep.subr.bf16.mxu1 %v2185_v26  ;;  %v2207_v26 = vpack.c.bf16 %v1002_v24, %v1001_v23  ;;  %v1042_v20 = vld [vmem:[#allocation9 + $0x2a8] sm:$0xff]  ;;  %v2251_v24 = vpack.c.bf16 %v1056_v18, %v1055_v13  ;;  %v1052_v18 = vld [vmem:[#allocation9 + $0x2f8] sm:$0xff] }
 0x141   : > { %v2221_v25 = vpack.c.bf16 %v1042_v20, %v1041_v19  ;;  %v1083_v19 = vld [vmem:[#allocation9 + $0x3f0] sm:$0xff]  ;;  %v1084_v20 = vld [vmem:[#allocation9 + $0x3f8] sm:$0xff] }
 0x142   : > { %2156 = vmatpush3.bf16.msra.mxu0 %v2155_v32  ;;  %v971_v32 = vld [vmem:[#allocation9 + $0x70] sm:$0xff] }
 0x143   : > { %2188 = vmatpush3.bf16.msra.mxu1 %v2187_v33  ;;  %2158 = vmatprep.subr.bf16.mxu0 %v2157_v34  ;;  %v972_v33 = vld [vmem:[#allocation9 + $0x78] sm:$0xff]  ;;  %v1003_v34 = vld [vmem:[#allocation9 + $0x170] sm:$0xff] }
 0x144   : > { %2190 = vmatprep.subr.bf16.mxu1 %v2189_v38  ;;  %v2179_v35 = vpack.c.bf16 %v972_v33, %v971_v32  ;;  %v2211_v37 = vpack.c.bf16 %v1004_v36, %v1003_v34  ;;  %v1037_v38 = vld [vmem:[#allocation9 + $0x280] sm:$0xff]  ;;  %v1044_v32 = vld [vmem:[#allocation9 + $0x2b8] sm:$0xff]  ;;  %v1075_v33 = vld [vmem:[#allocation9 + $0x3b0] sm:$0xff] }
 0x145   : > { %v2213_v41 = vpack.c.bf16 %v1038_v39, %v1037_v38  ;;  %v1076_v34 = vld [vmem:[#allocation9 + $0x3b8] sm:$0xff]  ;;  %v1027_v38 = vld [vmem:[#allocation9 + $0x230] sm:$0xff] }
 0x146   : > { %2160 = vmatpush3.bf16.msra.mxu0 %v2159_v44  ;;  %v625_v44 = vlaneseq  ;;  %v1028_v39 = vld [vmem:[#allocation9 + $0x238] sm:$0xff] }
 0x147   : > { %2192 = vmatpush3.bf16.msra.mxu1 %v2191_v15  ;;  %2162 = vmatprep.subr.bf16.mxu0 %v2161_v45 }
 0x148   : > { %2194 = vmatprep.subr.bf16.mxu1 %v2193_v48  ;;  %v3004_v15 = vshrl.u32 %v625_v44, 7  ;;  %v1046_v44 = vld [vmem:[#allocation9 + $0x2c8] sm:$0xff] }
 0x14a   : > { %2164 = vmatpush3.bf16.msra.mxu0 %v2163_v51  ;;  %v627_v45 = vsub.s32 0, %v3004_v15  ;;  %v635_v47 = vsub.s32 2, %v3004_v15  ;;  %v631_v48 = vsub.s32 1, %v3004_v15  ;;  %v639_v49 = vsub.s32 3, %v3004_v15 }
 0x14b   : > { %2196 = vmatpush3.bf16.msra.mxu1 %v2195_v52  ;;  %2166 = vmatprep.subr.bf16.mxu0 %v2165_v55 }
 0x14c   : > { %2198 = vmatprep.subr.bf16.mxu1 %v2197_v57  ;;  %v628_v50 = vrot.slane %v3007_v46, %v627_v45  ;;  %v636_v51 = vrot.slane %v3007_v46, %v635_v47  ;;  %v632_v52 = vrot.slane %v3007_v46, %v631_v48  ;;  %v640_v53 = vrot.slane %v3007_v46, %v639_v49  ;;  %v1077_v45 = vld [vmem:[#allocation9 + $0x3c0] sm:$0xff]  ;;  %v1078_v47 = vld [vmem:[#allocation9 + $0x3c8] sm:$0xff] }
 0x14d   : > { %v2227_v48 = vpack.c.bf16 %v1028_v39, %v1027_v38  ;;  %v2259_v49 = vpack.c.bf16 %v1060_v42, %v1059_v40 }
 0x14e   : > { %2168 = vmatpush3.bf16.msra.mxu0 %v2167_v61  ;;  %v1021_v61 = vld [vmem:[#allocation9 + $0x200] sm:$0xff] }
 0x14f   : > { %2200 = vmatpush3.bf16.msra.mxu1 %v2199_v63  ;;  %2170 = vmatprep.subr.bf16.mxu0 %v2169_v3  ;;  %v1053_v63 = vld [vmem:[#allocation9 + $0x300] sm:$0xff] }
 0x150   : > { %2202 = vmatprep.subr.bf16.mxu1 %v2201_v7  ;;  %v2215_v7 = vpack.c.bf16 %v1022_v62, %v1021_v61  ;;  %v2247_v9 = vpack.c.bf16 %v1054_v0, %v1053_v63  ;;  %v1031_v62 = vld [vmem:[#allocation9 + $0x250] sm:$0xff]  ;;  %v1032_v63 = vld [vmem:[#allocation9 + $0x258] sm:$0xff] }
 0x151   : > { %v1063_v0 = vld [vmem:[#allocation9 + $0x350] sm:$0xff] }
 0x152   : > { %2172 = vmatpush3.bf16.msra.mxu0 %v2171_v8 }
 0x153   : > { %2204 = vmatpush3.bf16.msra.mxu1 %v2203_v11  ;;  %2174 = vmatprep.subr.bf16.mxu0 %v2173_v17  ;;  %v1023_v11 = vld [vmem:[#allocation9 + $0x210] sm:$0xff]  ;;  %v2249_v17 = vpack.c.bf16 %v1072_v5, %v1071_v4  ;;  %v1050_v4 = vld [vmem:[#allocation9 + $0x2e8] sm:$0xff]  ;;  %v1081_v5 = vld [vmem:[#allocation9 + $0x3e0] sm:$0xff] }
 0x154   : > { %2206 = vmatprep.subr.bf16.mxu1 %v2205_v21  ;;  %v1073_v21 = vld [vmem:[#allocation9 + $0x3a0] sm:$0xff]  ;;  %v2219_v23 = vpack.c.bf16 %v1024_v12, %v1023_v11  ;;  %v1034_v11 = vld [vmem:[#allocation9 + $0x268] sm:$0xff] }
 0x155   : > { %v1065_v12 = vld [vmem:[#allocation9 + $0x360] sm:$0xff] }
 0x156   : > { %2176 = vmatpush3.bf16.msra.mxu0 %v2175_v22  ;;  %v1074_v22 = vld [vmem:[#allocation9 + $0x3a8] sm:$0xff] }
 0x157   : > { %2208 = vmatpush3.bf16.msra.mxu1 %v2207_v26  ;;  %2178 = vmatprep.subr.bf16.mxu0 %v2177_v30  ;;  %v1025_v26 = vld [vmem:[#allocation9 + $0x220] sm:$0xff]  ;;  %v2253_v29 = vpack.c.bf16 %v1074_v22, %v1073_v21  ;;  %v1058_v30 = vld [vmem:[#allocation9 + $0x328] sm:$0xff] }
 0x158   : > { %2210 = vmatprep.subr.bf16.mxu1 %v2209_v31  ;;  %v1043_v31 = vld [vmem:[#allocation9 + $0x2b0] sm:$0xff]  ;;  %v2255_v36 = vpack.c.bf16 %v1058_v30, %v1057_v28  ;;  %v1068_v28 = vld [vmem:[#allocation9 + $0x378] sm:$0xff] }
 0x15a   : > { %2180 = vmatpush3.bf16.msra.mxu0 %v2179_v35  ;;  %v2223_v35 = vpack.c.bf16 %v1026_v27, %v1025_v26  ;;  %v2273_v26 = vpack.c.bf16 %v1084_v20, %v1083_v19  ;;  %v1067_v27 = vld [vmem:[#allocation9 + $0x370] sm:$0xff]  ;;  %v1476_v19 = vld [vmem:[#allocation12 + $0x98] sm:$0xff] }
 0x15b   : > { %2212 = vmatpush3.bf16.msra.mxu1 %v2211_v37  ;;  %2214 = vmatprep.subr.bf16.mxu0 %v2213_v41  ;;  %v2225_v37 = vpack.c.bf16 %v1044_v32, %v1043_v31  ;;  %v2257_v41 = vpack.c.bf16 %v1076_v34, %v1075_v33  ;;  %v2275_v30 = vpack.c.bf16 %v1068_v28, %v1067_v27  ;;  %v643_v31 = vsub.s32 4, %v3004_v15  ;;  %v1461_v28 = vld [vmem:[#allocation12 + $0x20] sm:$0xff] }
 0x15c   : > { %2246 = vmatprep.subr.bf16.mxu1 %v2245_v43  ;;  %v1045_v43 = vld [vmem:[#allocation9 + $0x2c0] sm:$0xff]  ;;  %v651_v32 = vsub.s32 6, %v3004_v15  ;;  %v647_v33 = vsub.s32 5, %v3004_v15  ;;  %v655_v34 = vsub.s32 7, %v3004_v15 }
 0x15e   : > { %v656_v38 = vrot.slane %v3007_v46, %v655_v34  ;;  %v1463_v34 = vld [vmem:[#allocation12 + $0x30] sm:$0xff] }
 0x1d0   : > { %v731_v16 = vpop.f32.mrb[0].mxu0 }
 0x1d1   : > { %v732_v54 = vadd.f32 %v731_v16, %v628_v50  ;;  %v802_v55 = vpop.f32.mrb[0].mxu1  ;;  %v733_v56 = vpop.f32.mrb[1].mxu0  ;;  %v2229_v50 = vpack.c.bf16 %v1046_v44, %v1045_v43  ;;  %v2261_v16 = vpack.c.bf16 %v1078_v47, %v1077_v45 }
 0x1d2   : > { %v803_v57 = vadd.f32 %v802_v55, %v636_v51  ;;  %v734_v58 = vadd.f32 %v733_v56, %v632_v52  ;;  %v804_v59 = vpop.f32.mrb[1].mxu1  ;;  %v1029_v51 = vld [vmem:[#allocation9 + $0x240] sm:$0xff]  ;;  %v1030_v52 = vld [vmem:[#allocation9 + $0x248] sm:$0xff]  ;;  %v1047_v55 = vld [vmem:[#allocation9 + $0x2d0] sm:$0xff] }
 0x1d3   : > { %2411 = vtanh.f32 %v732_v54  ;;  %v805_v60 = vadd.f32 %v804_v59, %v640_v53  ;;  %v1061_v53 = vld [vmem:[#allocation9 + $0x340] sm:$0xff]  ;;  %v1062_v54 = vld [vmem:[#allocation9 + $0x348] sm:$0xff]  ;;  %v1048_v56 = vld [vmem:[#allocation9 + $0x2d8] sm:$0xff]  ;;  %v2231_v59 = vpack.c.bf16 %v1030_v52, %v1029_v51  ;;  %v1086_v52 = vstv %s1085_s9 }
 0x1d4   : > { %2413 = vtanh.f32 %v803_v57  ;;  %v1079_v57 = vld [vmem:[#allocation9 + $0x3d0] sm:$0xff]  ;;  %v2233_v61 = vpack.c.bf16 %v1048_v56, %v1047_v55 }
 0x1d5   : > { %2415 = vtanh.f32 %v734_v58  ;;  %v1080_v58 = vld [vmem:[#allocation9 + $0x3d8] sm:$0xff] }
 0x1d6   : > { %2417 = vtanh.f32 %v805_v60  ;;  %v2263_v60 = vpack.c.bf16 %v1062_v54, %v1061_v53  ;;  %v2265_v1 = vpack.c.bf16 %v1080_v58, %v1079_v57 }
 0x1dd   : > { %v2412_v3 = vpop.eup %2411 }
 0x1de   : > { %v2414_v6 = vpop.eup %2413 }
 0x1df   : > { %v2416_v8 = vpop.eup %2415 }
 0x1e0   : > { %v2418_v14 = vpop.eup %2417  ;;  %1151 = vmatprep.mubr.f32.mxu0 %v2416_v8  ;;  %v2267_v8 = vpack.c.bf16 %v1064_v2, %v1063_v0 }
 0x1e1   : > { %1221 = vmatprep.mubr.f32.mxu1 %v2418_v14  ;;  %1152 = vmatmul.mubr.f32.vlgmr.msra.gmra.mrb[4].mxu0 %v2412_v3  ;;  %v1049_v3 = vld [vmem:[#allocation9 + $0x2e0] sm:$0xff]  ;;  %v1066_v14 = vld [vmem:[#allocation9 + $0x368] sm:$0xff] }
 0x1e2   : > { %1222 = vmatmul.mubr.f32.vlgmr.msra.gmra.mrb[4].mxu1 %v2414_v6  ;;  %2216 = vmatpush3.bf16.msra.mxu0 %v2215_v7  ;;  %v1082_v6 = vld [vmem:[#allocation9 + $0x3e8] sm:$0xff]  ;;  %v2235_v7 = vpack.c.bf16 %v1032_v63, %v1031_v62  ;;  %v2271_v22 = vpack.c.bf16 %v1066_v14, %v1065_v12  ;;  %v1474_v12 = vld [vmem:[#allocation12 + $0x88] sm:$0xff] }
 0x1e3   : > { %2248 = vmatpush3.bf16.msra.mxu1 %v2247_v9  ;;  %2218 = vmatprep.subr.bf16.mxu0 %v2217_v10  ;;  %v2237_v9 = vpack.c.bf16 %v1050_v4, %v1049_v3  ;;  %v1033_v10 = vld [vmem:[#allocation9 + $0x260] sm:$0xff]  ;;  %v2269_v13 = vpack.c.bf16 %v1082_v6, %v1081_v5 }
 0x1e4   : > { %2250 = vmatprep.subr.bf16.mxu1 %v2249_v17  ;;  %v1051_v17 = vld [vmem:[#allocation9 + $0x2f0] sm:$0xff]  ;;  %v2239_v21 = vpack.c.bf16 %v1034_v11, %v1033_v10  ;;  %v2693_v10 = vmov 0.0  }
 0x1e5   : > { %v1473_v11 = vld [vmem:[#allocation12 + $0x80] sm:$0xff] }
 0x1e6   : > { %2220 = vmatpush3.bf16.msra.mxu0 %v2219_v23  ;;  %v2241_v23 = vpack.c.bf16 %v1052_v18, %v1051_v17  ;;  %v2277_v14 = vpack.c.bf16 %v1474_v12, %v1473_v11  ;;  %v1458_v17 = vld [vmem:[#allocation12 + $0x8] sm:$0xff]  ;;  %v1475_v18 = vld [vmem:[#allocation12 + $0x90] sm:$0xff] }
 0x1e7   : > { %2252 = vmatpush3.bf16.msra.mxu1 %v2251_v24  ;;  %2222 = vmatprep.subr.bf16.mxu0 %v2221_v25  ;;  %v1035_v24 = vld [vmem:[#allocation9 + $0x270] sm:$0xff]  ;;  %v1036_v25 = vld [vmem:[#allocation9 + $0x278] sm:$0xff] }
 0x1e8   : > { %2254 = vmatprep.subr.bf16.mxu1 %v2253_v29  ;;  %v2243_v29 = vpack.c.bf16 %v1036_v25, %v1035_v24  ;;  %v1477_v24 = vld [vmem:[#allocation12 + $0xa0] sm:$0xff]  ;;  %v1478_v25 = vld [vmem:[#allocation12 + $0xa8] sm:$0xff] }
 0x1e9   : > { %v2285_v27 = vpack.c.bf16 %v1478_v25, %v1477_v24 }
 0x1ea   : > { %2224 = vmatpush3.bf16.msra.mxu0 %v2223_v35  ;;  %v644_v35 = vrot.slane %v3007_v46, %v643_v31  ;;  %v1480_v31 = vld [vmem:[#allocation12 + $0xb8] sm:$0xff] }
 0x1eb   : > { %2256 = vmatpush3.bf16.msra.mxu1 %v2255_v36  ;;  %2226 = vmatprep.subr.bf16.mxu0 %v2225_v37  ;;  %v652_v36 = vrot.slane %v3007_v46, %v651_v32  ;;  %v648_v37 = vrot.slane %v3007_v46, %v647_v33 }
 0x1ec   : > { %2258 = vmatprep.subr.bf16.mxu1 %v2257_v41 }
 0x1ee   : > { %2228 = vmatpush3.bf16.msra.mxu0 %v2227_v48 }
 0x1ef   : > { %2260 = vmatpush3.bf16.msra.mxu1 %v2259_v49  ;;  %2230 = vmatprep.subr.bf16.mxu0 %v2229_v50 }
 0x1f0   : > { %2262 = vmatprep.subr.bf16.mxu1 %v2261_v16 }
 0x1f2   : > { %2232 = vmatpush3.bf16.msra.mxu0 %v2231_v59 }
 0x1f3   : > { %2264 = vmatpush3.bf16.msra.mxu1 %v2263_v60  ;;  %2234 = vmatprep.subr.bf16.mxu0 %v2233_v61 }
 0x1f4   : > { %2266 = vmatprep.subr.bf16.mxu1 %v2265_v1 }
 0x1f6   : > { %2236 = vmatpush3.bf16.msra.mxu0 %v2235_v7 }
 0x1f7   : > { %2268 = vmatpush3.bf16.msra.mxu1 %v2267_v8  ;;  %2238 = vmatprep.subr.bf16.mxu0 %v2237_v9  ;;  %v1380_v8 = vld [vmem:[#allocation11 + $0x8] sm:$0xff]  ;;  %v1379_v9 = vld [vmem:[#allocation11] sm:$0xff] }
 0x1f8   : > { %2270 = vmatprep.subr.bf16.mxu1 %v2269_v13  ;;  %v1457_v13 = vld [vmem:[#allocation12] sm:$0xff] }
 0x1f9   : > { %v2279_v20 = vpack.c.bf16 %v1458_v17, %v1457_v13 }
 0x1fa   : > { %2240 = vmatpush3.bf16.msra.mxu0 %v2239_v21  ;;  %v2281_v21 = vpack.c.bf16 %v1476_v19, %v1475_v18 }
 0x1fb   : > { %2272 = vmatpush3.bf16.msra.mxu1 %v2271_v22  ;;  %2242 = vmatprep.subr.bf16.mxu0 %v2241_v23  ;;  %v1459_v22 = vld [vmem:[#allocation12 + $0x10] sm:$0xff]  ;;  %v1460_v23 = vld [vmem:[#allocation12 + $0x18] sm:$0xff] }
 0x1fc   : > { %2274 = vmatprep.subr.bf16.mxu1 %v2273_v26  ;;  %v2283_v26 = vpack.c.bf16 %v1460_v23, %v1459_v22 }
 0x1fe   : > { %2244 = vmatpush3.bf16.msra.mxu0 %v2243_v29  ;;  %v1462_v29 = vld [vmem:[#allocation12 + $0x28] sm:$0xff] }
 0x1ff   : > { %2276 = vmatpush3.bf16.msra.mxu1 %v2275_v30  ;;  %1384 = vmatprep.subr.mxu0 %v1380_v8  ;;  %v1479_v30 = vld [vmem:[#allocation12 + $0xb0] sm:$0xff]  ;;  %v2287_v32 = vpack.c.bf16 %v1462_v29, %v1461_v28 }
 0x200   : > { %2278 = vmatprep.subr.bf16.mxu1 %v2277_v14  ;;  %v2289_v33 = vpack.c.bf16 %v1480_v31, %v1479_v30 }
 0x210   : > { %v873_v39 = vpop.f32.mrb[2].mxu0 }
 0x211   : > { %v874_v40 = vadd.f32 %v873_v39, %v644_v35  ;;  %v944_v41 = vpop.f32.mrb[2].mxu1  ;;  %v875_v42 = vpop.f32.mrb[3].mxu0  ;;  %v1464_v35 = vld [vmem:[#allocation12 + $0x38] sm:$0xff] }
 0x212   : > { %v945_v43 = vadd.f32 %v944_v41, %v652_v36  ;;  %v876_v44 = vadd.f32 %v875_v42, %v648_v37  ;;  %v946_v45 = vpop.f32.mrb[3].mxu1  ;;  %v1481_v36 = vld [vmem:[#allocation12 + $0xc0] sm:$0xff]  ;;  %v1482_v37 = vld [vmem:[#allocation12 + $0xc8] sm:$0xff]  ;;  %v1483_v42 = vld [vmem:[#allocation12 + $0xd0] sm:$0xff] }
 0x213   : > { %2419 = vtanh.f32 %v874_v40  ;;  %v947_v47 = vadd.f32 %v946_v45, %v656_v38  ;;  %v2291_v38 = vpack.c.bf16 %v1464_v35, %v1463_v34  ;;  %v2293_v39 = vpack.c.bf16 %v1482_v37, %v1481_v36  ;;  %v1465_v40 = vld [vmem:[#allocation12 + $0x40] sm:$0xff]  ;;  %v1466_v41 = vld [vmem:[#allocation12 + $0x48] sm:$0xff] }
 0x214   : > { %2421 = vtanh.f32 %v945_v43  ;;  %v1484_v43 = vld [vmem:[#allocation12 + $0xd8] sm:$0xff] }
 0x215   : > { %2423 = vtanh.f32 %v876_v44  ;;  %v2295_v44 = vpack.c.bf16 %v1466_v41, %v1465_v40  ;;  %v2297_v45 = vpack.c.bf16 %v1484_v43, %v1483_v42 }
 0x216   : > { %2425 = vtanh.f32 %v947_v47  ;;  %v1467_v47 = vld [vmem:[#allocation12 + $0x50] sm:$0xff] }
 0x21d   : > { %v2420_v15 = vpop.eup %2419 }
 0x21e   : > { %v2422_v48 = vpop.eup %2421 }
 0x21f   : > { %v2424_v49 = vpop.eup %2423 }
 0x220   : > { %v2426_v50 = vpop.eup %2425  ;;  %1291 = vmatprep.mubr.f32.mxu0 %v2424_v49  ;;  %v1486_v49 = vld [vmem:[#allocation12 + $0xe8] sm:$0xff] }
 0x221   : > { %1361 = vmatprep.mubr.f32.mxu1 %v2426_v50  ;;  %1292 = vmatmul.mubr.f32.vlgmr.msra.gmra.mrb[6].mxu0 %v2420_v15  ;;  %v1468_v15 = vld [vmem:[#allocation12 + $0x58] sm:$0xff] }
 0x222   : > { %1362 = vmatmul.mubr.f32.vlgmr.msra.gmra.mrb[6].mxu1 %v2422_v48  ;;  %1448 = vmatprep.mubr.f32.mxu0 %v2693_v10  ;;  %v1485_v48 = vld [vmem:[#allocation12 + $0xe0] sm:$0xff]  ;;  %v2299_v50 = vpack.c.bf16 %v1468_v15, %v1467_v47 }
 0x223   : > { %1385 = vmatpush1.msra.mxu0 %v1379_v9  ;;  %2280 = vmatpush3.bf16.msra.mxu1 %v2279_v20 }
 0x224   : > { %2282 = vmatprep.subr.bf16.mxu1 %v2281_v21 }
 0x227   : > { %2284 = vmatpush3.bf16.msra.mxu1 %v2283_v26 }
 0x228   : > { %2286 = vmatprep.subr.bf16.mxu1 %v2285_v27 }
 0x22b   : > { %2288 = vmatpush3.bf16.msra.mxu1 %v2287_v32 }
 0x22c   : > { %2290 = vmatprep.subr.bf16.mxu1 %v2289_v33 }
 0x22f   : > { %2292 = vmatpush3.bf16.msra.mxu1 %v2291_v38 }
 0x230   : > { %2294 = vmatprep.subr.bf16.mxu1 %v2293_v39 }
 0x233   : > { %2296 = vmatpush3.bf16.msra.mxu1 %v2295_v44 }
 0x234   : > { %2298 = vmatprep.subr.bf16.mxu1 %v2297_v45 }
 0x237   : > { %2300 = vmatpush3.bf16.msra.mxu1 %v2299_v50 }
 0x2b4   : > { %v1750_v46 = vpop.f32.mrb[4].mxu0 }
 0x2b5   : > { %v1785_v51 = vpop.f32.mrb[4].mxu1  ;;  %v1751_v53 = vpop.f32.mrb[5].mxu0 }
 0x2b6   : > { %v1752_v16 = vadd.f32 %v1751_v53, %v1750_v46  ;;  %v1786_v54 = vpop.f32.mrb[5].mxu1  ;;  %v2301_v46 = vpack.c.bf16 %v1486_v49, %v1485_v48 }
 0x2b7   : > { %v1787_v55 = vadd.f32 %v1786_v54, %v1785_v51  ;;  %v1469_v51 = vld [vmem:[#allocation12 + $0x60] sm:$0xff] }
 0x2b8   : > { %v1154_v56 = vadd.f32 %v1752_v16, %v1086_v52  ;;  %v1470_v52 = vld [vmem:[#allocation12 + $0x68] sm:$0xff]  ;;  %2302 = vmatprep.subr.bf16.mxu1 %v2301_v46 }
 0x2b9   : > { %v2303_v53 = vpack.c.bf16 %v1470_v52, %v1469_v51 }
 0x2ba   : > { %v1224_v57 = vadd.f32 %v1787_v55, %v1154_v56  ;;  %v1487_v56 = vld [vmem:[#allocation12 + $0xf0] sm:$0xff] }
 0x2bb   : > { %2304 = vmatpush3.bf16.msra.mxu1 %v2303_v53 }
 0x2f4   : > { %v1820_v58 = vpop.f32.mrb[6].mxu0 }
 0x2f5   : > { %v1855_v59 = vpop.f32.mrb[6].mxu1  ;;  %v1821_v60 = vpop.f32.mrb[7].mxu0 }
 0x2f6   : > { %v1822_v61 = vadd.f32 %v1821_v60, %v1820_v58  ;;  %v1856_v62 = vpop.f32.mrb[7].mxu1  ;;  %v1472_v60 = vld [vmem:[#allocation12 + $0x78] sm:$0xff] }
 0x2f7   : > { %v1857_v63 = vadd.f32 %v1856_v62, %v1855_v59  ;;  %v1471_v59 = vld [vmem:[#allocation12 + $0x70] sm:$0xff] }
 0x2f8   : > { %v1294_v0 = vadd.f32 %v1822_v61, %v1224_v57  ;;  %v1488_v57 = vld [vmem:[#allocation12 + $0xf8] sm:$0xff]  ;;  %v2307_v61 = vpack.c.bf16 %v1472_v60, %v1471_v59 }
 0x2f9   : > { %v2305_v58 = vpack.c.bf16 %v1488_v57, %v1487_v56 }
 0x2fa   : > { %v1364_v1 = vadd.f32 %v1857_v63, %v1294_v0  ;;  %v2431_v0 = vld [vmem:[%s2972_s10 + $0x8] sm:$0xff] }
 0x2fb   : > { %2306 = vmatprep.subr.bf16.mxu1 %v2305_v58 }
 0x2fc   : > { %v1368_v2 = vsel %vm1367_vm0, %v1364_v1, -inf  ;;  %2308 = vmatpush3.bf16.msra.mxu1 %v2307_v61 }
 0x2fd   : > { %1369 = vmax.xlane.f32.xlu0 %v1368_v2  ;;  %v2432_v2 = vld [vmem:[%s2972_s10] sm:$0xff] }
 0x38a   : > { %v1370_v3 = vpop.xlane.xlu0 %1369 }
 0x38b   : > { %v1371_v4 = vsub.f32 %v1364_v1, %v1370_v3 }
 0x38d   : > { %v1372_v5 = vmul.f32 1.442695, %v1371_v4 }
 0x38f   : > { %2427 = vpow2.f32 %v1372_v5 }
 0x399   : > { %v3025_v6 = vpop.eup %2427 }
 0x39a   : > { %v1374_v7 = vsel %vm1367_vm0, %v3025_v6, 0.0 }
 0x39b   : > { %1375 = vadd.xlane.f32.xlu0 %v1374_v7 }
 0x428   : > { %v1376_v16 = vpop.xlane.xlu0 %1375 }
 0x429   : > { %2429 = vrcp.f32 %v1376_v16 }
 0x433   : > { %v2430_v54 = vpop.eup %2429 }
 0x434   : > { %v1378_v55 = vmul.f32 %v2430_v54, %v3025_v6 }
 0x436   : > { %1712 = vmatmul.mubr.msk.f32.vlgmr.msra.gmra.mrb[8].mxu0 %vm1367_vm0, %v1378_v55 }
 0x509   : > { %v1450_v62 = vpop.f32.mrb[8].mxu0 }
 0x50a   : > { %v1452_v63 = vpop.f32.mrb[9].mxu0  ;;  %v1455_v3 = vmul.f32 %v2432_v2, %v1450_v62 }
 0x50b   : > { %v1456_v1 = vmul.f32 %v2431_v0, %v1452_v63 }
 0x50d   : > { %1553 = vmatprep.mubr.f32.mxu1 %v1456_v1 }
 0x50e   : > { %1554 = vmatmul.mubr.f32.vlgmr.msra.gmra.mrb[8].mxu1 %v1455_v3 }
 0x5e1   : > { %v1890_v4 = vpop.f32.mrb[8].mxu1 }
 0x5e2   : > { %v1891_v5 = vpop.f32.mrb[9].mxu1 }
 0x5e3   : > { %v1892_v6 = vadd.f32 %v1891_v5, %v1890_v4 }
 0x5e5   : > { %1560 = vst.msk [vmem:[%s364_s18] sm:$0xff] %vm1559_vm1, %v1892_v6 }
 0x5e6   : > { %2616 = shalt.err (!%p2613_p3)
}
 0x5e7   : > { %s2617_s12 = scalar_lea.hbm %s3038_s23, 128  ;;  %s2621_s9 = scalar_lea.hbm %s3089_s7, 256 }
 0x5e8   : > { %p2618_p6 = scmp.ne.s32.totalorder %s3038_s23, %s2617_s12  ;;  %p2622_p8 = scmp.lt.u32.totalorder %s3038_s23, %s3089_s7 }
 0x5e9   : > { %p2623_p0 = scmp.lt.u32.totalorder %s2621_s9, %s2617_s12  ;;  %p2625_p2 = scmp.lt.u32.totalorder %s2617_s12, %s3038_s23 }
 0x5ea   : > { %p2619_p9 = pnand %p2618_p6, %p3108_p7 }
 0x5eb   : > { %p2624_p5 = por %p2623_p0, %p2622_p8 }
 0x5ec   : > { %p2620_p4 = pneg %p2619_p9 }
 0x5ed   : > { %p2626_p10 = por %p2625_p2, %p2624_p5 }
 0x5ef   : > { %p2627_p1 = pnand %p2626_p10, %p2620_p4 }
 0x5f1   : > { %2630 = shalt.err (!%p2627_p1)
}
 0x5f2   : > { %2331 = dma.vmem_to_hbm [thread:$0]  (%p3108_p7), %s3040_s24, 128, %s3038_s23, %s1562_s15  }
 0x5f3 PF: > { %s1587_s18 = sand.u32 1, %s2669_s26   ;;  %p3109_p11 = scmp.ne.s32.totalorder %s3099_s4, 0 }
 0x5f4   : > { %p3110_p12 = scmp.ge.s32.totalorder %s2681_s29, 2  ;;  %s1588_s19 = scalar_lea.sflag [#allocation5], %s1587_s18 }
 0x5f6   : > { %p2354_p13 = pnand %p3110_p12, %p3109_p11 }
 0x5f8   : > { %2664 = dma.done.wait (!%p2354_p13), %s1588_s19, 128  }
 0x5f9   : > { %2666 = vsyncadd (!%p2354_p13), %s1588_s19, 4294967168  ;;  %p24_p3 = scmp.ge.s32.totalorder %s2898_s20, 4   ;;  %s3111_s26 = smov %s2673_s27 }
 0x5fa   : > { %s3112_s27 = smov %s2677_s28  ;;  %s3113_s28 = smov %s2910_s21 }
 0x5fb   : > { %s3114_s29 = smov %s2898_s20  ;;  %26 = sbr.rel (!%p24_p3) target bundleno = 10 (0xa), region = 113 }
 0x602   :  { %1593 = vsyncpa [#allocation4], 1 }
 0x603   :  { %1595 = vsyncpa [#allocation4 + $0x1], 1 }
 0x604   :  { %1596 = vsyncpa [#allocation7], 1 }
 0x605   :  { %1597 = vsyncpa [#allocation10], 1 }
 0x606   :  { %1598 = vsyncpa [#allocation13], 1 }
 0x607   :  { %1599 = vsyncpa [#allocation5], 1 }
 0x608   :  { %1601 = vsyncpa [#allocation5 + $0x1], 1 }

</bundles_post_ra>
